<compile_context>
chip_gen: v5e
topology: v5e:2x2
jax: 0.10.0
libtpu: 0.0.40
codegen_flags: <defaults>
</compile_context>

<pallas_src>
from types import SimpleNamespace

import jax
import jax.numpy as jnp
from jax.experimental import pallas as pl
from jax.experimental.pallas import tpu as pltpu


# ---------------------------------------------------------------------------
# Fused forward kernel (one batch element per grid step)
# ---------------------------------------------------------------------------
def _make_fused_kernel(H, W, Hp, n_proj):
    def kernel(x_ref, a1_ref, a2_ref, mask_ref, wfc1_ref, wfc2_ref, bfc_ref,
               *rest):
        proj_refs = rest[:n_proj]
        o_ref = rest[n_proj]
        f1p_ref = rest[n_proj + 1]            # VMEM scratch: (Hp, Wp*G)

        # ---- conv1 (3x3, pad=1) + ReLU on the extended (H+2)x(W+2) grid.
        # Each kernel-row tap = one MXU dot of a row-shifted VMEM view with a
        # banded weight matrix (in-kernel im2col; no HBM expansion).
        acc1 = jnp.dot(x_ref[0, 0:Hp, :], a1_ref[0],
                       preferred_element_type=jnp.float32)
        for di in (1, 2):
            acc1 = acc1 + jnp.dot(x_ref[0, di:di + Hp, :], a1_ref[di],
                                  preferred_element_type=jnp.float32)
        # ReLU, then zero the border ring: this IS the zero-padding of conv1's
        # HxW output that conv2 needs.  Kept in VMEM scratch so conv2 can take
        # cheap row-shifted views of it.
        f1p = jnp.maximum(acc1, 0.0) * mask_ref[...]
        f1p_ref[...] = f1p

        # ---- conv2 (3x3, pad=1) + ReLU on the HxW grid.
        acc2 = jnp.dot(f1p_ref[0:H, :], a2_ref[0],
                       preferred_element_type=jnp.float32)
        for di in (1, 2):
            acc2 = acc2 + jnp.dot(f1p_ref[di:di + H, :], a2_ref[di],
                                  preferred_element_type=jnp.float32)
        f2 = jnp.maximum(acc2, 0.0)                       # (H, W*G)

        # ---- global average pool + channel concat + fc(+bias), all folded
        # into MXU matmuls: ones-row dot does the row sum (no XLU sublane
        # mean); the pre-tiled / pre-scaled fc weights finish mean+concat+fc.
        ones_hp = jnp.full((1, Hp), 1.0, dtype=jnp.float32)
        ones_h = jnp.full((1, H), 1.0, dtype=jnp.float32)
        rows1 = jnp.dot(ones_hp, f1p,
                        preferred_element_type=jnp.float32)        # (1, Wp*G)
        rows2 = jnp.dot(ones_h, f2,
                        preferred_element_type=jnp.float32)        # (1, W*G)
        h = (jnp.dot(rows1, wfc1_ref[...], preferred_element_type=jnp.float32)
             + jnp.dot(rows2, wfc2_ref[...], preferred_element_type=jnp.float32)
             + bfc_ref[...])                                       # (1, dim)

        # ---- projector: Linear(no bias) [-> ReLU -> Linear(no bias) ...]
        z = h
        for i in range(n_proj):
            z = jnp.dot(z, proj_refs[i][...],
                        preferred_element_type=jnp.float32)
            if i < n_proj - 1:
                z = jnp.maximum(z, 0.0)
        o_ref[...] = z.reshape(1, 1, z.shape[-1]).astype(o_ref.dtype)

    return kernel


# ---------------------------------------------------------------------------
# One-time weight preprocessing (outside the hot path)
# ---------------------------------------------------------------------------
def _banded_conv_matrix(w_row, win, wout):
    """w_row: (3, cin, cout) taps of one kernel row -> (win*cin, wout*cout)
    banded matrix B with block[b, j] = w_row[b - j] for 0 <= b - j <= 2, so a
    row-shifted input slab (rows, win*cin) @ B does the conv along W with the
    W/channel axes folded into lanes."""
    b = jnp.arange(win)[:, None]
    j = jnp.arange(wout)[None, :]
    dj = b - j
    valid = ((dj >= 0) & (dj <= 2)).astype(w_row.dtype)              # (win, wout)
    blocks = w_row[jnp.clip(dj, 0, 2)] * valid[:, :, None, None]     # (win, wout, cin, cout)
    cin, cout = w_row.shape[1], w_row.shape[2]
    return jnp.transpose(blocks, (0, 2, 1, 3)).reshape(win * cin, wout * cout)


def prepare_constants(params, H, W):
    conv1_w = params["conv1_w"]            # (3, 3, Cin, G)
    conv2_w = params["conv2_w"]            # (3, 3, G, G)
    G = conv1_w.shape[3]
    Hp, Wp, Wpp = H + 2, W + 2, W + 4
    a1 = jnp.stack([_banded_conv_matrix(conv1_w[di], Wpp, Wp) for di in range(3)])
    a2 = jnp.stack([_banded_conv_matrix(conv2_w[di], Wp, W) for di in range(3)])
    # Border mask == zero-padding of conv1's output (needed by conv2).
    mrow = ((jnp.arange(Hp) >= 1) & (jnp.arange(Hp) <= H)).astype(jnp.float32)
    mcol = ((jnp.arange(Wp) >= 1) & (jnp.arange(Wp) <= W)).astype(jnp.float32)
    mask = mrow[:, None] * jnp.repeat(mcol, G)[None, :]              # (Hp, Wp*G)
    # Fold GAP (mean over HxW) + [f1|f2] concat + fc into pre-tiled weights.
    inv = 1.0 / float(H * W)
    wfc1 = jnp.tile(params["fc_w"][:G], (Wp, 1)) * inv               # (Wp*G, dim)
    wfc2 = jnp.tile(params["fc_w"][G:], (W, 1)) * inv                # (W*G, dim)
    return {"a1": a1, "a2": a2, "mask": mask, "wfc1": wfc1, "wfc2": wfc2,
            "fc_b": params["fc_b"], "proj_ws": list(params["proj_ws"])}


# ---------------------------------------------------------------------------
# SimCLR forward = exactly one pallas_call
# ---------------------------------------------------------------------------
def simclr_forward(consts, x_nchw):
    N, Cin, H, W = x_nchw.shape
    Hp, Wp = H + 2, W + 2
    Hpp, Wpp = H + 4, W + 4
    a1, a2 = consts["a1"], consts["a2"]
    mask, wfc1, wfc2 = consts["mask"], consts["wfc1"], consts["wfc2"]
    fc_b, proj_ws = consts["fc_b"], consts["proj_ws"]
    G = a2.shape[2] // W
    out_dim = proj_ws[-1].shape[1]
    n_proj = len(proj_ws)

    # One-time input formatting: NCHW -> channels-last, zero-pad spatial by 2,
    # fold W and C into the lane axis.  Only the network input touches XLA
    # glue; every intermediate lives in VMEM inside the fused kernel.
    x = jnp.transpose(x_nchw, (0, 2, 3, 1)).astype(jnp.float32)
    x = jnp.pad(x, ((0, 0), (2, 2), (2, 2), (0, 0)))
    x2 = x.reshape(N, Hpp, Wpp * Cin)

    kernel = _make_fused_kernel(H, W, Hp, n_proj)
    in_specs = [
        pl.BlockSpec((1, Hpp, Wpp * Cin), lambda n: (n, 0, 0)),   # per-batch slab
        pl.BlockSpec(a1.shape, lambda n: (0, 0, 0)),              # resident weights
        pl.BlockSpec(a2.shape, lambda n: (0, 0, 0)),
        pl.BlockSpec(mask.shape, lambda n: (0, 0)),
        pl.BlockSpec(wfc1.shape, lambda n: (0, 0)),
        pl.BlockSpec(wfc2.shape, lambda n: (0, 0)),
        pl.BlockSpec(fc_b.shape, lambda n: (0, 0)),
    ] + [pl.BlockSpec(w.shape, lambda n: (0, 0)) for w in proj_ws]

    z = pl.pallas_call(
        kernel,
        out_shape=jax.ShapeDtypeStruct((N, 1, out_dim), jnp.float32),
        grid=(N,),
        in_specs=in_specs,
        out_specs=pl.BlockSpec((1, 1, out_dim), lambda n: (n, 0, 0)),
        scratch_shapes=[pltpu.VMEM((Hp, Wp * G), jnp.float32)],
        compiler_params=pltpu.CompilerParams(
            dimension_semantics=("parallel",),   # v7x: 2 TCs split the batch
            vmem_limit_bytes=32 * 1024 * 1024),
    )(x2, a1, a2, mask, wfc1, wfc2, fc_b, *proj_ws)
    return z.reshape(N, out_dim)


# ---------------------------------------------------------------------------
# Parameter init (stand-in backbone + exact projector structure)
# ---------------------------------------------------------------------------
def init_params(args, key):
    keys = jax.random.split(key, 12)
    cin, growth, dim = args.in_features, 16, args.dim
    p = {
        "conv1_w": 0.1 * jax.random.normal(keys[0], (3, 3, cin, growth), jnp.float32),
        "conv2_w": 0.1 * jax.random.normal(keys[1], (3, 3, growth, growth), jnp.float32),
        "fc_w":    0.1 * jax.random.normal(keys[2], (2 * growth, dim), jnp.float32),
        "fc_b":    0.01 * jax.random.normal(keys[3], (1, dim), jnp.float32),
    }
    sizes = [64] + list(map(int, args.projector.split("-")))
    p["proj_ws"] = [
        0.1 * jax.random.normal(keys[4 + i], (sizes[i], sizes[i + 1]), jnp.float32)
        for i in range(len(sizes) - 1)
    ]
    return p


if __name__ == "__main__":
    args = SimpleNamespace(
        arch="densenet11",
        in_features=4,
        dim=64,                 # backbone output dim; 64 feeds the projector
        projector="128-128",
    )
    key = jax.random.PRNGKey(0)
    k_x, k_p = jax.random.split(key)
    x = jax.random.normal(k_x, (2, args.in_features, 16, 16), jnp.float32)  # NCHW
    params = init_params(args, k_p)
    consts = prepare_constants(params, H=16, W=16)

    fwd = jax.jit(simclr_forward)
    z = fwd(consts, x)
    z = jax.block_until_ready(z)
    assert z.shape == (2, 128) and z.dtype == jnp.float32
    print("KERNEL_OK")
</pallas_src>

<mosaic_0001>
module attributes {stable_mosaic.version = 11 : i64} {
  func.func @kernel(%arg0: i32, %arg1: memref<1x20x80xf32, #tpu.memory_space<vmem>>, %arg2: memref<3x80x288xf32, #tpu.memory_space<vmem>>, %arg3: memref<3x288x256xf32, #tpu.memory_space<vmem>>, %arg4: memref<18x288xf32, #tpu.memory_space<vmem>>, %arg5: memref<288x64xf32, #tpu.memory_space<vmem>>, %arg6: memref<256x64xf32, #tpu.memory_space<vmem>>, %arg7: memref<1x64xf32, #tpu.memory_space<vmem>>, %arg8: memref<64x128xf32, #tpu.memory_space<vmem>>, %arg9: memref<128x128xf32, #tpu.memory_space<vmem>>, %arg10: memref<1x1x128xf32, #tpu.memory_space<vmem>>, %arg11: memref<18x288xf32, #tpu.memory_space<vmem>>) attributes {dimension_semantics = [#tpu.dimension_semantics<parallel>], iteration_bounds = array<i64: 2>, scalar_prefetch = 0 : i64, scratch_operands = 1 : i64, tpu.core_type = #tpu.core_type<tc>, window_params = [{transform_indices = @transform_0, window_bounds = array<i64: 1, 20, 80>}, {pipeline_mode = #tpu.pipeline_mode<synchronous>, transform_indices = @transform_1, window_bounds = array<i64: 3, 80, 288>}, {pipeline_mode = #tpu.pipeline_mode<synchronous>, transform_indices = @transform_2, window_bounds = array<i64: 3, 288, 256>}, {pipeline_mode = #tpu.pipeline_mode<synchronous>, transform_indices = @transform_3, window_bounds = array<i64: 18, 288>}, {pipeline_mode = #tpu.pipeline_mode<synchronous>, transform_indices = @transform_4, window_bounds = array<i64: 288, 64>}, {pipeline_mode = #tpu.pipeline_mode<synchronous>, transform_indices = @transform_5, window_bounds = array<i64: 256, 64>}, {pipeline_mode = #tpu.pipeline_mode<synchronous>, transform_indices = @transform_6, window_bounds = array<i64: 1, 64>}, {pipeline_mode = #tpu.pipeline_mode<synchronous>, transform_indices = @transform_7, window_bounds = array<i64: 64, 128>}, {pipeline_mode = #tpu.pipeline_mode<synchronous>, transform_indices = @transform_8, window_bounds = array<i64: 128, 128>}, {transform_indices = @transform_9, window_bounds = array<i64: 1, 1, 128>}]} {
    %c0 = arith.constant 0 : index
    %c0_0 = arith.constant 0 : index
    %c0_1 = arith.constant 0 : index
    %0 = vector.load %arg1[%c0, %c0_0, %c0_1] : memref<1x20x80xf32, #tpu.memory_space<vmem>>, vector<1x18x80xf32>
    %1 = vector.shape_cast %0 : vector<1x18x80xf32> to vector<18x80xf32>
    %c0_2 = arith.constant 0 : index
    %c0_3 = arith.constant 0 : index
    %c0_4 = arith.constant 0 : index
    %2 = vector.load %arg2[%c0_2, %c0_3, %c0_4] : memref<3x80x288xf32, #tpu.memory_space<vmem>>, vector<1x80x288xf32>
    %3 = vector.shape_cast %2 : vector<1x80x288xf32> to vector<80x288xf32>
    %cst = arith.constant dense<0.000000e+00> : vector<18x288xf32>
    %4 = tpu.matmul %1, %3, %cst {dimension_numbers = #tpu.dot_dimension_numbers<[1], [0], [0], [1], [0, 0, 1, 1], [], []>} : vector<18x80xf32>, vector<80x288xf32>, vector<18x288xf32> -> vector<18x288xf32>
    %c0_5 = arith.constant 0 : index
    %c1 = arith.constant 1 : index
    %c0_6 = arith.constant 0 : index
    %5 = vector.load %arg1[%c0_5, %c1, %c0_6] : memref<1x20x80xf32, #tpu.memory_space<vmem>>, vector<1x18x80xf32>
    %6 = vector.shape_cast %5 : vector<1x18x80xf32> to vector<18x80xf32>
    %c1_7 = arith.constant 1 : index
    %c0_8 = arith.constant 0 : index
    %c0_9 = arith.constant 0 : index
    %7 = vector.load %arg2[%c1_7, %c0_8, %c0_9] : memref<3x80x288xf32, #tpu.memory_space<vmem>>, vector<1x80x288xf32>
    %8 = vector.shape_cast %7 : vector<1x80x288xf32> to vector<80x288xf32>
    %cst_10 = arith.constant dense<0.000000e+00> : vector<18x288xf32>
    %9 = tpu.matmul %6, %8, %cst_10 {dimension_numbers = #tpu.dot_dimension_numbers<[1], [0], [0], [1], [0, 0, 1, 1], [], []>} : vector<18x80xf32>, vector<80x288xf32>, vector<18x288xf32> -> vector<18x288xf32>
    %10 = arith.addf %4, %9 : vector<18x288xf32>
    %c0_11 = arith.constant 0 : index
    %c2 = arith.constant 2 : index
    %c0_12 = arith.constant 0 : index
    %11 = vector.load %arg1[%c0_11, %c2, %c0_12] : memref<1x20x80xf32, #tpu.memory_space<vmem>>, vector<1x18x80xf32>
    %12 = vector.shape_cast %11 : vector<1x18x80xf32> to vector<18x80xf32>
    %c2_13 = arith.constant 2 : index
    %c0_14 = arith.constant 0 : index
    %c0_15 = arith.constant 0 : index
    %13 = vector.load %arg2[%c2_13, %c0_14, %c0_15] : memref<3x80x288xf32, #tpu.memory_space<vmem>>, vector<1x80x288xf32>
    %14 = vector.shape_cast %13 : vector<1x80x288xf32> to vector<80x288xf32>
    %cst_16 = arith.constant dense<0.000000e+00> : vector<18x288xf32>
    %15 = tpu.matmul %12, %14, %cst_16 {dimension_numbers = #tpu.dot_dimension_numbers<[1], [0], [0], [1], [0, 0, 1, 1], [], []>} : vector<18x80xf32>, vector<80x288xf32>, vector<18x288xf32> -> vector<18x288xf32>
    %16 = arith.addf %10, %15 : vector<18x288xf32>
    %cst_17 = arith.constant 0.000000e+00 : f32
    %17 = vector.broadcast %cst_17 : f32 to vector<18x288xf32>
    %18 = arith.maximumf %16, %17 : vector<18x288xf32>
    %c0_18 = arith.constant 0 : index
    %c0_19 = arith.constant 0 : index
    %19 = vector.load %arg4[%c0_18, %c0_19] : memref<18x288xf32, #tpu.memory_space<vmem>>, vector<18x288xf32>
    %20 = arith.mulf %18, %19 : vector<18x288xf32>
    %c0_20 = arith.constant 0 : index
    %c0_21 = arith.constant 0 : index
    %21 = vector.load %arg11[%c0_20, %c0_21] : memref<18x288xf32, #tpu.memory_space<vmem>>, vector<18x288xf32>
    tpu.vector_store %arg11[%c0_20, %c0_21], %20 {strides = array<i32>} : memref<18x288xf32, #tpu.memory_space<vmem>>, vector<18x288xf32>,
    %c0_22 = arith.constant 0 : index
    %c0_23 = arith.constant 0 : index
    %22 = vector.load %arg11[%c0_22, %c0_23] : memref<18x288xf32, #tpu.memory_space<vmem>>, vector<16x288xf32>
    %c0_24 = arith.constant 0 : index
    %c0_25 = arith.constant 0 : index
    %c0_26 = arith.constant 0 : index
    %23 = vector.load %arg3[%c0_24, %c0_25, %c0_26] : memref<3x288x256xf32, #tpu.memory_space<vmem>>, vector<1x288x256xf32>
    %24 = vector.shape_cast %23 : vector<1x288x256xf32> to vector<288x256xf32>
    %cst_27 = arith.constant dense<0.000000e+00> : vector<16x256xf32>
    %25 = tpu.matmul %22, %24, %cst_27 {dimension_numbers = #tpu.dot_dimension_numbers<[1], [0], [0], [1], [0, 0, 1, 1], [], []>} : vector<16x288xf32>, vector<288x256xf32>, vector<16x256xf32> -> vector<16x256xf32>
    %c1_28 = arith.constant 1 : index
    %c0_29 = arith.constant 0 : index
    %26 = vector.load %arg11[%c1_28, %c0_29] : memref<18x288xf32, #tpu.memory_space<vmem>>, vector<16x288xf32>
    %c1_30 = arith.constant 1 : index
    %c0_31 = arith.constant 0 : index
    %c0_32 = arith.constant 0 : index
    %27 = vector.load %arg3[%c1_30, %c0_31, %c0_32] : memref<3x288x256xf32, #tpu.memory_space<vmem>>, vector<1x288x256xf32>
    %28 = vector.shape_cast %27 : vector<1x288x256xf32> to vector<288x256xf32>
    %cst_33 = arith.constant dense<0.000000e+00> : vector<16x256xf32>
    %29 = tpu.matmul %26, %28, %cst_33 {dimension_numbers = #tpu.dot_dimension_numbers<[1], [0], [0], [1], [0, 0, 1, 1], [], []>} : vector<16x288xf32>, vector<288x256xf32>, vector<16x256xf32> -> vector<16x256xf32>
    %30 = arith.addf %25, %29 : vector<16x256xf32>
    %c2_34 = arith.constant 2 : index
    %c0_35 = arith.constant 0 : index
    %31 = vector.load %arg11[%c2_34, %c0_35] : memref<18x288xf32, #tpu.memory_space<vmem>>, vector<16x288xf32>
    %c2_36 = arith.constant 2 : index
    %c0_37 = arith.constant 0 : index
    %c0_38 = arith.constant 0 : index
    %32 = vector.load %arg3[%c2_36, %c0_37, %c0_38] : memref<3x288x256xf32, #tpu.memory_space<vmem>>, vector<1x288x256xf32>
    %33 = vector.shape_cast %32 : vector<1x288x256xf32> to vector<288x256xf32>
    %cst_39 = arith.constant dense<0.000000e+00> : vector<16x256xf32>
    %34 = tpu.matmul %31, %33, %cst_39 {dimension_numbers = #tpu.dot_dimension_numbers<[1], [0], [0], [1], [0, 0, 1, 1], [], []>} : vector<16x288xf32>, vector<288x256xf32>, vector<16x256xf32> -> vector<16x256xf32>
    %35 = arith.addf %30, %34 : vector<16x256xf32>
    %cst_40 = arith.constant 0.000000e+00 : f32
    %36 = vector.broadcast %cst_40 : f32 to vector<16x256xf32>
    %37 = arith.maximumf %35, %36 : vector<16x256xf32>
    %cst_41 = arith.constant 1.000000e+00 : f32
    %38 = vector.broadcast %cst_41 : f32 to vector<1x18xf32>
    %cst_42 = arith.constant 1.000000e+00 : f32
    %39 = vector.broadcast %cst_42 : f32 to vector<1x16xf32>
    %cst_43 = arith.constant dense<0.000000e+00> : vector<1x288xf32>
    %40 = tpu.matmul %38, %20, %cst_43 {dimension_numbers = #tpu.dot_dimension_numbers<[1], [0], [0], [1], [0, 0, 1, 1], [], []>} : vector<1x18xf32>, vector<18x288xf32>, vector<1x288xf32> -> vector<1x288xf32>
    %cst_44 = arith.constant dense<0.000000e+00> : vector<1x256xf32>
    %41 = tpu.matmul %39, %37, %cst_44 {dimension_numbers = #tpu.dot_dimension_numbers<[1], [0], [0], [1], [0, 0, 1, 1], [], []>} : vector<1x16xf32>, vector<16x256xf32>, vector<1x256xf32> -> vector<1x256xf32>
    %c0_45 = arith.constant 0 : index
    %c0_46 = arith.constant 0 : index
    %42 = vector.load %arg5[%c0_45, %c0_46] : memref<288x64xf32, #tpu.memory_space<vmem>>, vector<288x64xf32>
    %cst_47 = arith.constant dense<0.000000e+00> : vector<1x64xf32>
    %43 = tpu.matmul %40, %42, %cst_47 {dimension_numbers = #tpu.dot_dimension_numbers<[1], [0], [0], [1], [0, 0, 1, 1], [], []>} : vector<1x288xf32>, vector<288x64xf32>, vector<1x64xf32> -> vector<1x64xf32>
    %c0_48 = arith.constant 0 : index
    %c0_49 = arith.constant 0 : index
    %44 = vector.load %arg6[%c0_48, %c0_49] : memref<256x64xf32, #tpu.memory_space<vmem>>, vector<256x64xf32>
    %cst_50 = arith.constant dense<0.000000e+00> : vector<1x64xf32>
    %45 = tpu.matmul %41, %44, %cst_50 {dimension_numbers = #tpu.dot_dimension_numbers<[1], [0], [0], [1], [0, 0, 1, 1], [], []>} : vector<1x256xf32>, vector<256x64xf32>, vector<1x64xf32> -> vector<1x64xf32>
    %46 = arith.addf %43, %45 : vector<1x64xf32>
    %c0_51 = arith.constant 0 : index
    %c0_52 = arith.constant 0 : index
    %47 = vector.load %arg7[%c0_51, %c0_52] : memref<1x64xf32, #tpu.memory_space<vmem>>, vector<1x64xf32>
    %48 = arith.addf %46, %47 : vector<1x64xf32>
    %c0_53 = arith.constant 0 : index
    %c0_54 = arith.constant 0 : index
    %49 = vector.load %arg8[%c0_53, %c0_54] : memref<64x128xf32, #tpu.memory_space<vmem>>, vector<64x128xf32>
    %cst_55 = arith.constant dense<0.000000e+00> : vector<1x128xf32>
    %50 = tpu.matmul %48, %49, %cst_55 {dimension_numbers = #tpu.dot_dimension_numbers<[1], [0], [0], [1], [0, 0, 1, 1], [], []>} : vector<1x64xf32>, vector<64x128xf32>, vector<1x128xf32> -> vector<1x128xf32>
    %cst_56 = arith.constant 0.000000e+00 : f32
    %51 = vector.broadcast %cst_56 : f32 to vector<1x128xf32>
    %52 = arith.maximumf %50, %51 : vector<1x128xf32>
    %c0_57 = arith.constant 0 : index
    %c0_58 = arith.constant 0 : index
    %53 = vector.load %arg9[%c0_57, %c0_58] : memref<128x128xf32, #tpu.memory_space<vmem>>, vector<128x128xf32>
    %cst_59 = arith.constant dense<0.000000e+00> : vector<1x128xf32>
    %54 = tpu.matmul %52, %53, %cst_59 {dimension_numbers = #tpu.dot_dimension_numbers<[1], [0], [0], [1], [0, 0, 1, 1], [], []>} : vector<1x128xf32>, vector<128x128xf32>, vector<1x128xf32> -> vector<1x128xf32>
    %55 = vector.shape_cast %54 : vector<1x128xf32> to vector<1x1x128xf32>
    %c0_60 = arith.constant 0 : index
    %c0_61 = arith.constant 0 : index
    %c0_62 = arith.constant 0 : index
    %56 = vector.load %arg10[%c0_60, %c0_61, %c0_62] : memref<1x1x128xf32, #tpu.memory_space<vmem>>, vector<1x1x128xf32>
    tpu.vector_store %arg10[%c0_60, %c0_61, %c0_62], %55 {strides = array<i32>} : memref<1x1x128xf32, #tpu.memory_space<vmem>>, vector<1x1x128xf32>,
    return
  }
  func.func @transform_0(%arg0: i32) -> (i32, i32, i32) {
    %c0_i32 = arith.constant 0 : i32
    %c0_i32_0 = arith.constant 0 : i32
    %c0_i32_1 = arith.constant 0 : i32
    return %arg0, %c0_i32, %c0_i32_0 : i32, i32, i32
  }
  func.func @transform_1(%arg0: i32) -> (i32, i32, i32) {
    %c0_i32 = arith.constant 0 : i32
    %c0_i32_0 = arith.constant 0 : i32
    %c0_i32_1 = arith.constant 0 : i32
    %c0_i32_2 = arith.constant 0 : i32
    return %c0_i32, %c0_i32_0, %c0_i32_1 : i32, i32, i32
  }
  func.func @transform_2(%arg0: i32) -> (i32, i32, i32) {
    %c0_i32 = arith.constant 0 : i32
    %c0_i32_0 = arith.constant 0 : i32
    %c0_i32_1 = arith.constant 0 : i32
    %c0_i32_2 = arith.constant 0 : i32
    return %c0_i32, %c0_i32_0, %c0_i32_1 : i32, i32, i32
  }
  func.func @transform_3(%arg0: i32) -> (i32, i32) {
    %c0_i32 = arith.constant 0 : i32
    %c0_i32_0 = arith.constant 0 : i32
    %c0_i32_1 = arith.constant 0 : i32
    return %c0_i32, %c0_i32_0 : i32, i32
  }
  func.func @transform_4(%arg0: i32) -> (i32, i32) {
    %c0_i32 = arith.constant 0 : i32
    %c0_i32_0 = arith.constant 0 : i32
    %c0_i32_1 = arith.constant 0 : i32
    return %c0_i32, %c0_i32_0 : i32, i32
  }
  func.func @transform_5(%arg0: i32) -> (i32, i32) {
    %c0_i32 = arith.constant 0 : i32
    %c0_i32_0 = arith.constant 0 : i32
    %c0_i32_1 = arith.constant 0 : i32
    return %c0_i32, %c0_i32_0 : i32, i32
  }
  func.func @transform_6(%arg0: i32) -> (i32, i32) {
    %c0_i32 = arith.constant 0 : i32
    %c0_i32_0 = arith.constant 0 : i32
    %c0_i32_1 = arith.constant 0 : i32
    return %c0_i32, %c0_i32_0 : i32, i32
  }
  func.func @transform_7(%arg0: i32) -> (i32, i32) {
    %c0_i32 = arith.constant 0 : i32
    %c0_i32_0 = arith.constant 0 : i32
    %c0_i32_1 = arith.constant 0 : i32
    return %c0_i32, %c0_i32_0 : i32, i32
  }
  func.func @transform_8(%arg0: i32) -> (i32, i32) {
    %c0_i32 = arith.constant 0 : i32
    %c0_i32_0 = arith.constant 0 : i32
    %c0_i32_1 = arith.constant 0 : i32
    return %c0_i32, %c0_i32_0 : i32, i32
  }
  func.func @transform_9(%arg0: i32) -> (i32, i32, i32) {
    %c0_i32 = arith.constant 0 : i32
    %c0_i32_0 = arith.constant 0 : i32
    %c0_i32_1 = arith.constant 0 : i32
    return %arg0, %c0_i32, %c0_i32_0 : i32, i32, i32
  }
}

</mosaic_0001>

<bundles_post_ra>
// kernel: simclr_forward.1
= control target key start
LH: loop header
LB: loop body
LE: loop exit
PB: predicated region body
PF: predicated region fallthrough
CT: control target
= control target key end

     0   :  { %s2913_s0 = inlined_call_operand.vmem [shape: f32[2,20,80], index: 0, kind: input, shape index: {}]   ;;  %s2914_s1 = inlined_call_operand.hbm [shape: f32[3,80,288], index: 1, kind: input, shape index: {}]   ;;  %s2915_s2 = inlined_call_operand.hbm [shape: f32[3,288,256], index: 2, kind: input, shape index: {}]   ;;  %s2916_s3 = inlined_call_operand.vmem [shape: f32[18,288], index: 3, kind: input, shape index: {}]   ;;  %s2917_s4 = inlined_call_operand.vmem [shape: f32[288,64], index: 4, kind: input, shape index: {}]   ;;  %s2918_s5 = inlined_call_operand.vmem [shape: f32[256,64], index: 5, kind: input, shape index: {}]   ;;  %s2919_s6 = inlined_call_operand.vmem [shape: f32[1,64], index: 6, kind: input, shape index: {}]   ;;  %s2920_s7 = inlined_call_operand.vmem [shape: f32[64,128], index: 7, kind: input, shape index: {}]   ;;  %s2921_s8 = inlined_call_operand.vmem [shape: f32[128,128], index: 8, kind: input, shape index: {}]   ;;  %s2922_s9 = inlined_call_operand.hbm [shape: f32[2,1,128], index: 9, kind: output, shape index: {}]  }
   0x1   :  { %2923 = sst [smem:[#allocation12_spill]] %s2914_s1 }
   0x2   :  { %14 = vsyncpa [#allocation4], 0 }
   0x3   :  { %15 = vsyncpa [#allocation7], 0 }
   0x4   :  { %16 = vsyncpa [#allocation5], 0 }
   0x5   :  { %18 = vsyncpa [#allocation5 + $0x1], 0  ;;  %s2265_s30 = smov 0   ;;  %s2267_s10 = smov 0  }
   0x6   :  { %s2269_s11 = smov 0   ;;  %s2271_s12 = smov 0  }
   0x7 LB: > { %s2286_s13 = sadd.s32 4294967295, %s2206_s12   ;;  %s1950_s14 = sadd.s32 4294967294, %s2206_s12   ;;  %s2206_s12 = sphi %s2271_s12, %s2931_s12   ;;  %s2202_s11 = sphi %s2269_s11, %s2930_s11   ;;  %s2198_s10 = sphi %s2267_s10, %s2929_s10   ;;  %s2194_s30 = sphi %s2265_s30, %s2928_s30  }
   0x8   : > { %s2290_s15 = sadd.s32 1, %s2206_s12   ;;  %s225_s16 = sadd.s32 1, %s2202_s11 }
   0x9   : > { %s222_s17 = ssub.s32 %s2206_s12, %s2290_s15  ;;  %p235_p0 = scmp.ne.s32.totalorder %s2202_s11, %s2198_s10 }
   0xa   : > { %p223_p1 = scmp.eq.s32.totalorder %s222_s17, 0  ;;  %p236_p2 = scmp.eq.s32.totalorder %s2286_s13, 1 }
   0xb   : > { %p241_p3 = scmp.ne.s32.totalorder %s2198_s10, %s2194_s30  ;;  %p242_p4 = scmp.eq.s32.totalorder %s1950_s14, 1 }
   0xc   : > { %s2301_s18 = scalar_select %p223_p1, %s2202_s11, %s225_s16  }
   0xd   : > { %p2303_p5 = por %p236_p2, %p235_p0  ;;  %p2307_p6 = por %p242_p4, %p241_p3 }
   0xe   : > { %p1951_p7 = scmp.ge.s32.totalorder %s2206_s12, 1  ;;  %p249_p8 = scmp.lt.s32.totalorder %s2206_s12, 3 }
   0xf   : > { %p2032_p9 = scmp.eq.s32.totalorder %s2286_s13, 0  ;;  %s2927_s1 = sld [smem:[#allocation12_spill]] }
  0x10   : > { %p2314_p10 = pnand %p1951_p7, %p249_p8  ;;  %s2208_s25 = smov [#allocation3]  }
  0x11   : > { %s262_s26 = sshll.u32 %s2208_s25, 4  ;;  %s274_s29 = sshll.u32 %s2915_s2, 4  ;;  %s263_s26 = int_to_ptr.vmem [resolvable:$true] %s262_s26  ;;  %s275_s29 = int_to_ptr.hbm [resolvable:$true] %s274_s29 }
  0x12   : > { %p2021_p11 = pneg %p2314_p10  ;;  %s2209_s14 = smov 384  }
  0x13   : > { %s2210_s16 = smov 24   ;;  %s2211_s17 = smov [#allocation6]  }
  0x14   : > { %p2022_p12 = pnand %p2032_p9, %p2021_p11  ;;  %s276_s22 = sshll.u32 %s2211_s17, 4  ;;  %s277_s22 = int_to_ptr.vmem [resolvable:$true] %s276_s22 }
  0x15   : > { %s260_s24 = sshll.u32 %s2927_s1, 4  ;;  %s2212_s23 = smov 256   ;;  %s261_s24 = int_to_ptr.hbm [resolvable:$true] %s260_s24 }
  0x16   : > { %2024 = dma.hbm_to_vmem [thread:$0]  (!%p2022_p12), %s261_s24, 11520, %s263_s26, [#allocation4], %s2209_s14, %s2209_s14, %s2210_s16  }
  0x17   : > { %s2213_s1 = smov 16   ;;  %318 = sbr.rel (%p2314_p10) target bundleno = 1008 (0x3f0), region = 56 }
  0x18   : > { %2027 = dma.hbm_to_vmem [thread:$0]  (!%p2022_p12), %s275_s29, 27648, %s277_s22, [#allocation7], %s2212_s23, %s2212_s23, %s2213_s1  }
  0x1c   : > { %2181 = dma.done.wait (%p2032_p9), [#allocation4], 11520  }
  0x1d   : > { %2183 = vsyncadd (%p2032_p9), [#allocation4], 4294955776 }
  0x1e   : > { %2185 = dma.done.wait (%p2032_p9), [#allocation7], 27648  }
  0x1f   : > { %2187 = vsyncadd (%p2032_p9), [#allocation7], 4294939648  ;;  %v428_v0 = vld [vmem:[#allocation3 + $0x1c8] sm:$0xff]  ;;  %v429_v1 = vld [vmem:[#allocation3 + $0x1d0] sm:$0xff]  ;;  %p359_p13 = scmp.lt.s32.totalorder %s2286_s13, 1  ;;  %vm431_vm0 = vcmask 654336  }
  0x20   : > { %v430_v2 = vld [vmem:[#allocation3 + $0x1d8] sm:$0xff]  ;;  %447 = vmatpush.msra.mxu0 %v428_v0  ;;  %473 = vmatpush.msra.mxu1 %v429_v1  ;;  %v425_v4 = vld [vmem:[#allocation3 + $0x1b0] sm:$0xff]  ;;  %v427_v6 = vld [vmem:[#allocation3 + $0x1c0] sm:$0xff]  ;;  %vm940_vm1 = vcmask 1046528   ;;  %vm765_vm2 = vcmask 261120   ;;  %vm772_vm3 = vcmask 254976  }
  0x21   : > { %v394_v3 = vld [vmem:[#allocation3 + $0xd8] sm:$0xff]  ;;  %499 = vmatpush.msra.mxu2 %v430_v2  ;;  %v391_v7 = vld [vmem:[#allocation3 + $0xc0] sm:$0xff]  ;;  %v424_v10 = vld [vmem:[#allocation3 + $0x1a8] sm:$0xff]  ;;  %s2342_s1 = scalar_select %p359_p13, %s2286_s13, 1  ;;  %vm1504_vm4 = vcmask 1041408   ;;  %vm1330_vm5 = vcmask 1045504  }
  0x22   : > { %v426_v5 = vld [vmem:[#allocation3 + $0x1b8] sm:$0xff]  ;;  %534 = vmatpush.msra.mxu3 %v394_v3  ;;  %448 = vmatpush.msra.mxu0 %v425_v4  ;;  %v423_v9 = vld [vmem:[#allocation3 + $0x1a0] sm:$0xff]  ;;  %v388_v11 = vld [vmem:[#allocation3 + $0xa8] sm:$0xff]  ;;  %vm1500_vm6 = vcmask 146432   ;;  %vm1574_vm7 = vcmask 130048   ;;  %vm1798_vm8 = vcmask 523264  }
  0x23   : > { %v422_v8 = vld [vmem:[#allocation3 + $0x198] sm:$0xff]  ;;  %474 = vmatpush.msra.mxu1 %v426_v5  ;;  %500 = vmatpush.msra.mxu2 %v427_v6  ;;  %v419_v12 = vld [vmem:[#allocation3 + $0x180] sm:$0xff]  ;;  %v420_v13 = vld [vmem:[#allocation3 + $0x188] sm:$0xff]  ;;  %s2010_s21 = smul.u32 24, %s2342_s1  ;;  %s2156_s1 = scalar_lea.hbm %s2922_s9, 2 }
  0x24   : > { %535 = vmatpush.msra.mxu3 %v391_v7  ;;  %449 = vmatpush.msra.mxu0 %v422_v8  ;;  %v421_v14 = vld [vmem:[#allocation3 + $0x190] sm:$0xff]  ;;  %v416_v16 = vld [vmem:[#allocation3 + $0x168] sm:$0xff]  ;;  %v418_v18 = vld [vmem:[#allocation3 + $0x178] sm:$0xff] }
  0x25   : > { %475 = vmatpush.msra.mxu1 %v423_v9  ;;  %v385_v15 = vld [vmem:[#allocation3 + $0x90] sm:$0xff]  ;;  %501 = vmatpush.msra.mxu2 %v424_v10  ;;  %v382_v19 = vld [vmem:[#allocation3 + $0x78] sm:$0xff]  ;;  %v415_v22 = vld [vmem:[#allocation3 + $0x160] sm:$0xff]  ;;  %s2348_s26 = scalar_lea.vmem %s2913_s0, %s2010_s21  ;;  %s357_s21 = sand.u32 1, %s2198_s10  }
  0x26   : > { %536 = vmatpush.msra.mxu3 %v388_v11  ;;  %v417_v17 = vld [vmem:[#allocation3 + $0x170] sm:$0xff]  ;;  %450 = vmatpush.msra.mxu0 %v419_v12  ;;  %v414_v21 = vld [vmem:[#allocation3 + $0x158] sm:$0xff]  ;;  %v379_v23 = vld [vmem:[#allocation3 + $0x60] sm:$0xff]  ;;  %s358_s27 = scalar_lea.vmem [#allocation8], %s357_s21  ;;  %s1861_s14 = scalar_lea.sflag [#allocation5], %s357_s21 }
  0x27   : > { %476 = vmatpush.msra.mxu1 %v420_v13  ;;  %502 = vmatpush.msra.mxu2 %v421_v14  ;;  %v413_v20 = vld [vmem:[#allocation3 + $0x150] sm:$0xff]  ;;  %v410_v24 = vld [vmem:[#allocation3 + $0x138] sm:$0xff]  ;;  %v411_v25 = vld [vmem:[#allocation3 + $0x140] sm:$0xff]  ;;  %s1871_s28 = sshll.u32 %s358_s27, 4  ;;  %s1872_s28 = int_to_ptr.vmem [resolvable:$true] %s1871_s28 }
  0x28   : > { %537 = vmatpush.msra.mxu3 %v385_v15  ;;  %451 = vmatpush.msra.mxu0 %v416_v16  ;;  %v412_v26 = vld [vmem:[#allocation3 + $0x148] sm:$0xff]  ;;  %v407_v28 = vld [vmem:[#allocation3 + $0x120] sm:$0xff]  ;;  %v409_v30 = vld [vmem:[#allocation3 + $0x130] sm:$0xff] }
  0x29   : > { %477 = vmatpush.msra.mxu1 %v417_v17  ;;  %503 = vmatpush.msra.mxu2 %v418_v18  ;;  %v376_v27 = vld [vmem:[#allocation3 + $0x48] sm:$0xff]  ;;  %v373_v31 = vld [vmem:[#allocation3 + $0x30] sm:$0xff]  ;;  %v406_v34 = vld [vmem:[#allocation3 + $0x118] sm:$0xff] }
  0x2a   : > { %538 = vmatpush.msra.mxu3 %v382_v19  ;;  %452 = vmatpush.msra.mxu0 %v413_v20  ;;  %v408_v29 = vld [vmem:[#allocation3 + $0x128] sm:$0xff]  ;;  %v405_v33 = vld [vmem:[#allocation3 + $0x110] sm:$0xff]  ;;  %v370_v35 = vld [vmem:[#allocation3 + $0x18] sm:$0xff] }
  0x2b   : > { %478 = vmatpush.msra.mxu1 %v414_v21  ;;  %504 = vmatpush.msra.mxu2 %v415_v22  ;;  %v404_v32 = vld [vmem:[#allocation3 + $0x108] sm:$0xff]  ;;  %v401_v36 = vld [vmem:[#allocation3 + $0xf0] sm:$0xff]  ;;  %v402_v37 = vld [vmem:[#allocation3 + $0xf8] sm:$0xff] }
  0x2c   : > { %539 = vmatpush.msra.mxu3 %v379_v23  ;;  %453 = vmatpush.msra.mxu0 %v410_v24  ;;  %v403_v38 = vld [vmem:[#allocation3 + $0x100] sm:$0xff]  ;;  %v2352_v41 = vld [vmem:[%s2348_s26] sm:$0xff]  ;;  %v396_v43 = vld [vmem:[#allocation3 + $0xe8] sm:$0xff] }
  0x2d   : > { %479 = vmatpush.msra.mxu1 %v411_v25  ;;  %505 = vmatpush.msra.mxu2 %v412_v26  ;;  %v367_v39 = vld [vmem:[#allocation3] sm:$0xff]  ;;  %v637_v44 = vld [vmem:[#allocation3 + $0x2b8] sm:$0xff]  ;;  %v392_v46 = vld [vmem:[#allocation3 + $0xc8] sm:$0xff] }
  0x2e   : > { %540 = vmatpush.msra.mxu3 %v376_v27  ;;  %454 = vmatpush.msra.mxu0 %v407_v28  ;;  %v397_v40 = vld [vmem:[%s2348_s26 + $0x1] sm:$0xff]  ;;  %v393_v47 = vld [vmem:[#allocation3 + $0xd0] sm:$0xff]  ;;  %v635_v49 = vld [vmem:[#allocation3 + $0x2a8] sm:$0xff] }
  0x2f   : > { %480 = vmatpush.msra.mxu1 %v408_v29  ;;  %506 = vmatpush.msra.mxu2 %v409_v30  ;;  %v395_v42 = vld [vmem:[#allocation3 + $0xe0] sm:$0xff]  ;;  %v389_v50 = vld [vmem:[#allocation3 + $0xb0] sm:$0xff]  ;;  %v390_v51 = vld [vmem:[#allocation3 + $0xb8] sm:$0xff] }
  0x30   : > { %541 = vmatpush.msra.mxu3 %v373_v31  ;;  %455 = vmatpush.msra.mxu0 %v404_v32  ;;  %v638_v45 = vld [vmem:[#allocation3 + $0x2c0] sm:$0xff]  ;;  %v631_v52 = vld [vmem:[#allocation3 + $0x288] sm:$0xff]  ;;  %v632_v53 = vld [vmem:[#allocation3 + $0x290] sm:$0xff] }
  0x31   : > { %481 = vmatpush.msra.mxu1 %v405_v33  ;;  %507 = vmatpush.msra.mxu2 %v406_v34  ;;  %v634_v48 = vld [vmem:[#allocation3 + $0x2a0] sm:$0xff]  ;;  %v386_v56 = vld [vmem:[#allocation3 + $0x98] sm:$0xff]  ;;  %v628_v58 = vld [vmem:[#allocation3 + $0x270] sm:$0xff] }
  0x32   : > { %542 = vmatpush.msra.mxu3 %v370_v35  ;;  %456 = vmatpush.msra.mxu0 %v401_v36  ;;  %v398_v54 = vld [vmem:[%s2348_s26 + $0x9] sm:$0xff]  ;;  %v629_v59 = vld [vmem:[#allocation3 + $0x278] sm:$0xff]  ;;  %v381_v1 = vld [vmem:[#allocation3 + $0x70] sm:$0xff] }
  0x33   : > { %482 = vmatpush.msra.mxu1 %v402_v37  ;;  %508 = vmatpush.msra.mxu2 %v403_v38  ;;  %v2361_v55 = vld [vmem:[%s2348_s26 + $0x8] sm:$0xff]  ;;  %v384_v61 = vld [vmem:[#allocation3 + $0x88] sm:$0xff]  ;;  %v625_v62 = vld [vmem:[#allocation3 + $0x258] sm:$0xff] }
  0x34   : > { %543 = vmatpush.msra.mxu3 %v367_v39  ;;  %1959 = vmatmul.msk.f32.vlgmr.msra.gmra.mxu0 %vm431_vm0, %v397_v40  ;;  %v387_v57 = vld [vmem:[#allocation3 + $0xa0] sm:$0xff]  ;;  %v380_v0 = vld [vmem:[#allocation3 + $0x68] sm:$0xff]  ;;  %v377_v6 = vld [vmem:[#allocation3 + $0x50] sm:$0xff] }
  0x35   : > { %1962 = vmatmul.msk.f32.vlgmr.msra.gmra.mxu1 %vm431_vm0, %v397_v40  ;;  %1965 = vmatmul.msk.f32.vlgmr.msra.gmra.mxu2 %vm431_vm0, %v397_v40  ;;  %v383_v60 = vld [vmem:[#allocation3 + $0x80] sm:$0xff]  ;;  %v623_v3 = vld [vmem:[#allocation3 + $0x248] sm:$0xff]  ;;  %v378_v7 = vld [vmem:[#allocation3 + $0x58] sm:$0xff] }
  0x36   : > { %1968 = vmatmul.msk.f32.vlgmr.msra.gmra.mxu3 %vm431_vm0, %v2352_v41  ;;  %560 = vmatpush.msrb.mxu0 %v395_v42  ;;  %v626_v63 = vld [vmem:[#allocation3 + $0x260] sm:$0xff]  ;;  %v399_v4 = vld [vmem:[%s2348_s26 + $0x11] sm:$0x3]  ;;  %v620_v9 = vld [vmem:[#allocation3 + $0x230] sm:$0xff] }
  0x37   : > { %586 = vmatpush.msrb.mxu1 %v396_v43  ;;  %655 = vmatpush.msrb.mxu2 %v637_v44  ;;  %v622_v2 = vld [vmem:[#allocation3 + $0x240] sm:$0xff]  ;;  %v2370_v5 = vld [vmem:[%s2348_s26 + $0x10] sm:$0x3]  ;;  %v374_v10 = vld [vmem:[#allocation3 + $0x38] sm:$0xff] }
  0x38   : > { %681 = vmatpush.msrb.mxu3 %v638_v45  ;;  %561 = vmatpush.msrb.mxu0 %v392_v46  ;;  %v619_v8 = vld [vmem:[#allocation3 + $0x228] sm:$0xff]  ;;  %v375_v11 = vld [vmem:[#allocation3 + $0x40] sm:$0xff]  ;;  %v616_v12 = vld [vmem:[#allocation3 + $0x210] sm:$0xff] }
  0x39   : > { %587 = vmatpush.msrb.mxu1 %v393_v47  ;;  %656 = vmatpush.msrb.mxu2 %v634_v48  ;;  %v617_v13 = vld [vmem:[#allocation3 + $0x218] sm:$0xff]  ;;  %v371_v14 = vld [vmem:[#allocation3 + $0x20] sm:$0xff]  ;;  %v372_v15 = vld [vmem:[#allocation3 + $0x28] sm:$0xff] }
  0x3a   : > { %682 = vmatpush.msrb.mxu3 %v635_v49  ;;  %562 = vmatpush.msrb.mxu0 %v389_v50  ;;  %v613_v16 = vld [vmem:[#allocation3 + $0x1f8] sm:$0xff]  ;;  %v614_v17 = vld [vmem:[#allocation3 + $0x200] sm:$0xff]  ;;  %v368_v18 = vld [vmem:[#allocation3 + $0x8] sm:$0xff] }
  0x3b   : > { %588 = vmatpush.msrb.mxu1 %v390_v51  ;;  %657 = vmatpush.msrb.mxu2 %v631_v52  ;;  %v369_v19 = vld [vmem:[#allocation3 + $0x10] sm:$0xff]  ;;  %v610_v20 = vld [vmem:[#allocation3 + $0x1e0] sm:$0xff]  ;;  %v611_v21 = vld [vmem:[#allocation3 + $0x1e8] sm:$0xff] }
  0x3c   : > { %683 = vmatpush.msrb.mxu3 %v632_v53  ;;  %1960 = vmatmul.msk.f32.gmra.mxu0 %vm431_vm0, %v398_v54  ;;  %v606_v22 = vld [vmem:[%s2348_s26 + $0x2] sm:$0xff]  ;;  %v639_v23 = vld [vmem:[#allocation3 + $0x2c8] sm:$0xff]  ;;  %v636_v24 = vld [vmem:[#allocation3 + $0x2b0] sm:$0xff] }
  0x3d   : > { %1963 = vmatmul.msk.f32.gmra.mxu1 %vm431_vm0, %v398_v54  ;;  %1966 = vmatmul.msk.f32.gmra.mxu2 %vm431_vm0, %v398_v54  ;;  %v633_v25 = vld [vmem:[#allocation3 + $0x298] sm:$0xff]  ;;  %v607_v26 = vld [vmem:[%s2348_s26 + $0xa] sm:$0xff]  ;;  %v919_v30 = vld [vmem:[#allocation6 + $0x420] sm:$0xff] }
  0x3e   : > { %1969 = vmatmul.msk.f32.gmra.mxu3 %vm431_vm0, %v2361_v55  ;;  %563 = vmatpush.msrb.mxu0 %v386_v56  ;;  %v630_v27 = vld [vmem:[#allocation3 + $0x280] sm:$0xff]  ;;  %v627_v28 = vld [vmem:[#allocation3 + $0x268] sm:$0xff]  ;;  %v624_v31 = vld [vmem:[#allocation3 + $0x250] sm:$0xff] }
  0x3f   : > { %589 = vmatpush.msrb.mxu1 %v387_v57  ;;  %658 = vmatpush.msrb.mxu2 %v628_v58  ;;  %v921_v29 = vld [vmem:[#allocation6 + $0x430] sm:$0xff]  ;;  %v608_v33 = vld [vmem:[%s2348_s26 + $0x12] sm:$0x3]  ;;  %v621_v34 = vld [vmem:[#allocation3 + $0x238] sm:$0xff]  ;;  %s1869_s26 = scalar_lea.hbm %s2922_s9, %s2286_s13 }
  0x40   : > { %684 = vmatpush.msrb.mxu3 %v629_v59  ;;  %564 = vmatpush.msrb.mxu0 %v383_v60  ;;  %v917_v32 = vld [vmem:[#allocation6 + $0x410] sm:$0xff]  ;;  %v615_v36 = vld [vmem:[#allocation3 + $0x208] sm:$0xff]  ;;  %v612_v37 = vld [vmem:[#allocation3 + $0x1f0] sm:$0xff]  ;;  %s1873_s29 = sshll.u32 %s1869_s26, 4  ;;  %s1874_s29 = int_to_ptr.hbm [resolvable:$true] %s1873_s29 }
  0x41   : > { %590 = vmatpush.msrb.mxu1 %v384_v61  ;;  %659 = vmatpush.msrb.mxu2 %v625_v62  ;;  %v618_v35 = vld [vmem:[#allocation3 + $0x220] sm:$0xff]  ;;  %v915_v38 = vld [vmem:[#allocation6 + $0x400] sm:$0xff]  ;;  %v888_v58 = vld [vmem:[#allocation6 + $0x328] sm:$0xff]  ;;  %s2150_s16 = sshra.s32 %s1874_s29, 4  ;;  %s2151_s16 = int_to_ptr.hbm [resolvable:$true] %s2150_s16 }
  0x42   : > { %685 = vmatpush.msrb.mxu3 %v626_v63  ;;  %565 = vmatpush.msrb.mxu0 %v380_v0  ;;  %v913_v39 = vld [vmem:[#allocation6 + $0x3f0] sm:$0xff]  ;;  %v911_v40 = vld [vmem:[#allocation6 + $0x3e0] sm:$0xff]  ;;  %v886_v61 = vld [vmem:[#allocation6 + $0x318] sm:$0xff]  ;;  %s2152_s17 = scalar_lea.hbm %s2151_s16, 1  ;;  %p2157_p3 = scmp.lt.s32.totalorder %s2151_s16, %s2922_s9 }
  0x43   : > { %591 = vmatpush.msrb.mxu1 %v381_v1  ;;  %660 = vmatpush.msrb.mxu2 %v622_v2  ;;  %v907_v42 = vld [vmem:[#allocation6 + $0x3c0] sm:$0xff]  ;;  %v905_v43 = vld [vmem:[#allocation6 + $0x3b0] sm:$0xff]  ;;  %v884_v0 = vld [vmem:[#allocation6 + $0x308] sm:$0xff]  ;;  %p2153_p0 = scmp.ne.s32.totalorder %s2151_s16, %s2152_s17  ;;  %p2158_p4 = scmp.lt.s32.totalorder %s2156_s1, %s2152_s17 }
  0x44   : > { %686 = vmatpush.msrb.mxu3 %v623_v3  ;;  %1961 = vmatmul.msk.f32.gmra.mxu0 %vm431_vm0, %v399_v4  ;;  %v903_v44 = vld [vmem:[#allocation6 + $0x3a0] sm:$0xff]  ;;  %v901_v45 = vld [vmem:[#allocation6 + $0x390] sm:$0xff]  ;;  %v882_v3 = vld [vmem:[#allocation6 + $0x2f8] sm:$0xff] }
  0x45   : > { %1964 = vmatmul.msk.f32.gmra.mxu1 %vm431_vm0, %v399_v4  ;;  %1967 = vmatmul.msk.f32.gmra.mxu2 %vm431_vm0, %v399_v4  ;;  %v899_v46 = vld [vmem:[#allocation6 + $0x380] sm:$0xff]  ;;  %v889_v47 = vld [vmem:[#allocation6 + $0x330] sm:$0xff]  ;;  %p2154_p1 = pnand %p2153_p0, %p2303_p5  ;;  %p2159_p7 = por %p2158_p4, %p2157_p3 }
  0x46   : > { %1970 = vmatmul.msk.f32.gmra.mxu3 %vm431_vm0, %v2370_v5  ;;  %566 = vmatpush.msrb.mxu0 %v377_v6  ;;  %v897_v48 = vld [vmem:[#allocation6 + $0x370] sm:$0xff]  ;;  %v887_v49 = vld [vmem:[#allocation6 + $0x320] sm:$0xff]  ;;  %v880_v6 = vld [vmem:[#allocation6 + $0x2e8] sm:$0xff] }
  0x47   : > { %592 = vmatpush.msrb.mxu1 %v378_v7  ;;  %661 = vmatpush.msrb.mxu2 %v619_v8  ;;  %v895_v50 = vld [vmem:[#allocation6 + $0x360] sm:$0xff]  ;;  %v885_v51 = vld [vmem:[#allocation6 + $0x310] sm:$0xff]  ;;  %p2155_p2 = pneg %p2154_p1 }
  0x48   : > { %687 = vmatpush.msrb.mxu3 %v620_v9  ;;  %567 = vmatpush.msrb.mxu0 %v374_v10  ;;  %v893_v52 = vld [vmem:[#allocation6 + $0x350] sm:$0xff]  ;;  %v883_v53 = vld [vmem:[#allocation6 + $0x300] sm:$0xff]  ;;  %v878_v10 = vld [vmem:[#allocation6 + $0x2d8] sm:$0xff] }
  0x49   : > { %593 = vmatpush.msrb.mxu1 %v375_v11  ;;  %662 = vmatpush.msrb.mxu2 %v616_v12  ;;  %v891_v54 = vld [vmem:[#allocation6 + $0x340] sm:$0xff]  ;;  %v810_v56 = vld [vmem:[#allocation6 + $0xf0] sm:$0xff]  ;;  %p2160_p8 = pnand %p2159_p7, %p2155_p2 }
  0x4a   : > { %688 = vmatpush.msrb.mxu3 %v617_v13  ;;  %568 = vmatpush.msrb.mxu0 %v371_v14  ;;  %v881_v57 = vld [vmem:[#allocation6 + $0x2f0] sm:$0xff]  ;;  %v808_v59 = vld [vmem:[#allocation6 + $0xe0] sm:$0xff]  ;;  %v876_v13 = vld [vmem:[#allocation6 + $0x2c8] sm:$0xff] }
  0x4b   : > { %594 = vmatpush.msrb.mxu1 %v372_v15  ;;  %663 = vmatpush.msrb.mxu2 %v613_v16  ;;  %v879_v60 = vld [vmem:[#allocation6 + $0x2e0] sm:$0xff]  ;;  %v806_v62 = vld [vmem:[#allocation6 + $0xd0] sm:$0xff]  ;;  %v874_v16 = vld [vmem:[#allocation6 + $0x2b8] sm:$0xff] }
  0x4c   : > { %689 = vmatpush.msrb.mxu3 %v614_v17  ;;  %569 = vmatpush.msrb.mxu0 %v368_v18  ;;  %v877_v63 = vld [vmem:[#allocation6 + $0x2d0] sm:$0xff]  ;;  %v804_v1 = vld [vmem:[#allocation6 + $0xc0] sm:$0xff] }
  0x4d   : > { %595 = vmatpush.msrb.mxu1 %v369_v19  ;;  %664 = vmatpush.msrb.mxu2 %v610_v20  ;;  %v875_v2 = vld [vmem:[#allocation6 + $0x2c0] sm:$0xff]  ;;  %v802_v4 = vld [vmem:[#allocation6 + $0xb0] sm:$0xff]  ;;  %v872_v19 = vld [vmem:[#allocation6 + $0x2a8] sm:$0xff] }
  0x4e   : > { %690 = vmatpush.msrb.mxu3 %v611_v21  ;;  %1971 = vmatmul.msk.f32.vlgmr.msrb.gmra.mxu0 %vm431_vm0, %v2352_v41  ;;  %v800_v7 = vld [vmem:[#allocation6 + $0xa0] sm:$0xff]  ;;  %v798_v11 = vld [vmem:[#allocation6 + $0x90] sm:$0xff] }
  0x4f   : > { %1974 = vmatmul.msk.f32.vlgmr.msrb.gmra.mxu1 %vm431_vm0, %v2352_v41  ;;  %1977 = vmatmul.msk.f32.vlgmr.msrb.gmra.mxu2 %vm431_vm0, %v606_v22  ;;  %v909_v41 = vld [vmem:[#allocation6 + $0x3d0] sm:$0xff]  ;;  %v871_v8 = vld [vmem:[#allocation6 + $0x2a0] sm:$0xff] }
  0x50   : > { %1980 = vmatmul.msk.f32.vlgmr.msrb.gmra.mxu3 %vm431_vm0, %v606_v22  ;;  %707 = vmatpush.msra.mxu0 %v639_v23  ;;  %v869_v12 = vld [vmem:[#allocation6 + $0x290] sm:$0xff]  ;;  %v796_v14 = vld [vmem:[#allocation6 + $0x80] sm:$0xff] }
  0x51   : > { %987 = vmatpush.msra.mxu2 %v921_v29  ;;  %964 = vmatpush.msra.mxu1 %v889_v47  ;;  %v867_v15 = vld [vmem:[#allocation6 + $0x280] sm:$0xff]  ;;  %v794_v17 = vld [vmem:[#allocation6 + $0x70] sm:$0xff]  ;;  %v862_v47 = vld [vmem:[#allocation6 + $0x258] sm:$0xff] }
  0x52   : > { %708 = vmatpush.msra.mxu0 %v636_v24  ;;  %v865_v18 = vld [vmem:[#allocation6 + $0x270] sm:$0xff]  ;;  %v792_v20 = vld [vmem:[#allocation6 + $0x60] sm:$0xff] }
  0x53   : > { %988 = vmatpush.msra.mxu2 %v919_v30  ;;  %965 = vmatpush.msra.mxu1 %v887_v49  ;;  %v929_v23 = vld [vmem:[#allocation6 + $0x470] sm:$0xff]  ;;  %v863_v24 = vld [vmem:[#allocation6 + $0x260] sm:$0xff]  ;;  %v868_v30 = vld [vmem:[#allocation6 + $0x288] sm:$0xff] }
  0x54   : > { %709 = vmatpush.msra.mxu0 %v633_v25  ;;  %1022 = vmatpush.msra.mxu3 %v929_v23  ;;  %v861_v29 = vld [vmem:[#allocation6 + $0x250] sm:$0xff] }
  0x55   : > { %989 = vmatpush.msra.mxu2 %v917_v32  ;;  %966 = vmatpush.msra.mxu1 %v885_v51  ;;  %v925_v32 = vld [vmem:[#allocation6 + $0x450] sm:$0xff]  ;;  %v860_v51 = vld [vmem:[#allocation6 + $0x248] sm:$0xff] }
  0x56   : > { %1972 = vmatmul.msk.f32.gmra.mxu0 %vm431_vm0, %v2361_v55  ;;  %v782_v49 = vld [vmem:[#allocation6 + $0x10] sm:$0xff] }
  0x57   : > { %1975 = vmatmul.msk.f32.gmra.mxu1 %vm431_vm0, %v2361_v55  ;;  %1978 = vmatmul.msk.f32.gmra.mxu2 %vm431_vm0, %v607_v26  ;;  %v890_v55 = vld [vmem:[#allocation6 + $0x338] sm:$0xff] }
  0x58   : > { %1981 = vmatmul.msk.f32.gmra.mxu3 %vm431_vm0, %v607_v26  ;;  %710 = vmatpush.msra.mxu0 %v630_v27  ;;  %v790_v27 = vld [vmem:[#allocation6 + $0x50] sm:$0xff] }
  0x59   : > { %990 = vmatpush.msra.mxu2 %v915_v38  ;;  %967 = vmatpush.msra.mxu1 %v883_v53  ;;  %v786_v38 = vld [vmem:[#allocation6 + $0x30] sm:$0xff]  ;;  %v780_v53 = vld [vmem:[#allocation6] sm:$0xff] }
  0x5a   : > { %711 = vmatpush.msra.mxu0 %v627_v28  ;;  %v927_v28 = vld [vmem:[#allocation6 + $0x460] sm:$0xff] }
  0x5b   : > { %991 = vmatpush.msra.mxu2 %v913_v39  ;;  %968 = vmatpush.msra.mxu1 %v881_v57  ;;  %v922_v39 = vld [vmem:[#allocation6 + $0x438] sm:$0xff] }
  0x5c   : > { %712 = vmatpush.msra.mxu0 %v624_v31  ;;  %1023 = vmatpush.msra.mxu3 %v927_v28  ;;  %v788_v31 = vld [vmem:[#allocation6 + $0x40] sm:$0xff]  ;;  %v896_v28 = vld [vmem:[#allocation6 + $0x368] sm:$0xff] }
  0x5d   : > { %992 = vmatpush.msra.mxu2 %v911_v40  ;;  %969 = vmatpush.msra.mxu1 %v879_v60  ;;  %v864_v40 = vld [vmem:[#allocation6 + $0x268] sm:$0xff] }
  0x5e   : > { %1973 = vmatmul.msk.f32.gmra.mxu0 %vm431_vm0, %v2370_v5  ;;  %1024 = vmatpush.msra.mxu3 %v925_v32  ;;  %v894_v32 = vld [vmem:[#allocation6 + $0x358] sm:$0xff] }
  0x5f   : > { %1976 = vmatmul.msk.f32.gmra.mxu1 %vm431_vm0, %v2370_v5  ;;  %1979 = vmatmul.msk.f32.gmra.mxu2 %vm431_vm0, %v608_v33  ;;  %v873_v5 = vld [vmem:[#allocation6 + $0x2b0] sm:$0xff] }
  0x60   : > { %1982 = vmatmul.msk.f32.gmra.mxu3 %vm431_vm0, %v608_v33  ;;  %713 = vmatpush.msra.mxu0 %v621_v34 }
  0x61   : > { %993 = vmatpush.msra.mxu2 %v909_v41  ;;  %970 = vmatpush.msra.mxu1 %v877_v63  ;;  %v850_v63 = vld [vmem:[#allocation6 + $0x230] sm:$0xff] }
  0x62   : > { %714 = vmatpush.msra.mxu0 %v618_v35  ;;  %v866_v35 = vld [vmem:[#allocation6 + $0x278] sm:$0xff] }
  0x63   : > { %994 = vmatpush.msra.mxu2 %v907_v42  ;;  %971 = vmatpush.msra.mxu1 %v875_v2 }
  0x64   : > { %715 = vmatpush.msra.mxu0 %v615_v36  ;;  %v930_v36 = vld [vmem:[#allocation6 + $0x478] sm:$0xff] }
  0x65   : > { %995 = vmatpush.msra.mxu2 %v905_v43  ;;  %972 = vmatpush.msra.mxu1 %v873_v5  ;;  %v928_v43 = vld [vmem:[#allocation6 + $0x468] sm:$0xff] }
  0x66   : > { %716 = vmatpush.msra.mxu0 %v612_v37  ;;  %v923_v37 = vld [vmem:[#allocation6 + $0x440] sm:$0xff] }
  0x67   : > { %1983 = vmatmul.msk.f32.vlgmr.msra.gmra.mxu0 %vm431_vm0, %v606_v22  ;;  %996 = vmatpush.msra.mxu2 %v903_v44  ;;  %v784_v44 = vld [vmem:[#allocation6 + $0x20] sm:$0xff] }
  0x68   : > { %1033 = vmatpush.msrb.mxu0 %v890_v55  ;;  %973 = vmatpush.msra.mxu1 %v871_v8 }
  0x69   : > { %997 = vmatpush.msra.mxu2 %v901_v45  ;;  %1025 = vmatpush.msra.mxu3 %v923_v37  ;;  %v892_v37 = vld [vmem:[#allocation6 + $0x348] sm:$0xff] }
  0x6a   : > { %1034 = vmatpush.msrb.mxu0 %v888_v58  ;;  %974 = vmatpush.msra.mxu1 %v869_v12  ;;  %v846_v12 = vld [vmem:[#allocation6 + $0x210] sm:$0xff] }
  0x6b   : > { %998 = vmatpush.msra.mxu2 %v899_v46  ;;  %1056 = vmatpush.msrb.mxu3 %v922_v39  ;;  %v920_v46 = vld [vmem:[#allocation6 + $0x428] sm:$0xff] }
  0x6c   : > { %1035 = vmatpush.msrb.mxu0 %v886_v61  ;;  %975 = vmatpush.msra.mxu1 %v867_v15  ;;  %v910_v61 = vld [vmem:[#allocation6 + $0x3d8] sm:$0xff] }
  0x6d   : > { %999 = vmatpush.msra.mxu2 %v897_v48  ;;  %v926_v48 = vld [vmem:[#allocation6 + $0x458] sm:$0xff]  ;;  %1057 = vmatpush.msrb.mxu3 %v920_v46 }
  0x6e   : > { %1036 = vmatpush.msrb.mxu0 %v884_v0  ;;  %976 = vmatpush.msra.mxu1 %v865_v18  ;;  %v906_v0 = vld [vmem:[#allocation6 + $0x3b8] sm:$0xff]  ;;  %v900_v18 = vld [vmem:[#allocation6 + $0x388] sm:$0xff] }
  0x6f   : > { %1984 = vmatmul.msk.f32.gmra.mxu0 %vm431_vm0, %v607_v26  ;;  %1000 = vmatpush.msra.mxu2 %v895_v50  ;;  %v870_v26 = vld [vmem:[#allocation6 + $0x298] sm:$0xff] }
  0x70   : > { %1037 = vmatpush.msrb.mxu0 %v882_v3  ;;  %977 = vmatpush.msra.mxu1 %v863_v24  ;;  %v918_v50 = vld [vmem:[#allocation6 + $0x418] sm:$0xff] }
  0x71   : > { %1001 = vmatpush.msra.mxu2 %v893_v52  ;;  %v924_v52 = vld [vmem:[#allocation6 + $0x448] sm:$0xff]  ;;  %1058 = vmatpush.msrb.mxu3 %v918_v50 }
  0x72   : > { %1038 = vmatpush.msrb.mxu0 %v880_v6  ;;  %978 = vmatpush.msra.mxu1 %v861_v29 }
  0x73   : > { %1002 = vmatpush.msra.mxu2 %v891_v54  ;;  %v916_v54 = vld [vmem:[#allocation6 + $0x408] sm:$0xff] }
  0x74   : > { %1039 = vmatpush.msrb.mxu0 %v878_v10  ;;  %1059 = vmatpush.msrb.mxu3 %v916_v54 }
  0x75   : > { %1107 = vmatpush.msrb.mxu2 %v810_v56  ;;  %v914_v56 = vld [vmem:[#allocation6 + $0x3f8] sm:$0xff] }
  0x76   : > { %1040 = vmatpush.msrb.mxu0 %v876_v13  ;;  %1060 = vmatpush.msrb.mxu3 %v914_v56  ;;  %v902_v13 = vld [vmem:[#allocation6 + $0x398] sm:$0xff] }
  0x77   : > { %1985 = vmatmul.msk.f32.gmra.mxu0 %vm431_vm0, %v608_v33  ;;  %1108 = vmatpush.msrb.mxu2 %v808_v59  ;;  %v859_v33 = vld [vmem:[#allocation6 + $0x240] sm:$0xff]  ;;  %v912_v59 = vld [vmem:[#allocation6 + $0x3e8] sm:$0xff]  ;;  %v843_v56 = vld [vmem:[#allocation6 + $0x1f8] sm:$0xff] }
  0x78   : > { %1041 = vmatpush.msrb.mxu0 %v874_v16  ;;  %979 = vmatpush.msra.mxu1 %v859_v33 }
  0x79   : > { %1109 = vmatpush.msrb.mxu2 %v806_v62  ;;  %1061 = vmatpush.msrb.mxu3 %v912_v59  ;;  %v908_v62 = vld [vmem:[#allocation6 + $0x3c8] sm:$0xff]  ;;  %v751_v59 = vld [vmem:[%s2916_s3 + $0x30] sm:$0x3] }
  0x7a   : > { %1042 = vmatpush.msrb.mxu0 %v872_v19  ;;  %1091 = vmatpush.msrb.mxu1 %v930_v36 }
  0x7b   : > { %1110 = vmatpush.msrb.mxu2 %v804_v1  ;;  %1062 = vmatpush.msrb.mxu3 %v910_v61 }
  0x7c   : > { %1043 = vmatpush.msrb.mxu0 %v870_v26  ;;  %1092 = vmatpush.msrb.mxu1 %v928_v43 }
  0x7d   : > { %1111 = vmatpush.msrb.mxu2 %v802_v4  ;;  %1063 = vmatpush.msrb.mxu3 %v908_v62  ;;  %v848_v4 = vld [vmem:[#allocation6 + $0x220] sm:$0xff] }
  0x7e   : > { %1044 = vmatpush.msrb.mxu0 %v868_v30  ;;  %1093 = vmatpush.msrb.mxu1 %v926_v48  ;;  %v840_v62 = vld [vmem:[#allocation6 + $0x1e0] sm:$0xff] }
  0x7f   : > { %1112 = vmatpush.msrb.mxu2 %v800_v7  ;;  %1064 = vmatpush.msrb.mxu3 %v906_v0  ;;  %v904_v7 = vld [vmem:[#allocation6 + $0x3a8] sm:$0xff] }
  0x80   : > { %1045 = vmatpush.msrb.mxu0 %v866_v35  ;;  %1094 = vmatpush.msrb.mxu1 %v924_v52  ;;  %v842_v52 = vld [vmem:[#allocation6 + $0x1f0] sm:$0xff] }
  0x81   : > { %1113 = vmatpush.msrb.mxu2 %v798_v11  ;;  %1065 = vmatpush.msrb.mxu3 %v904_v7 }
  0x82   : > { %1046 = vmatpush.msrb.mxu0 %v864_v40 }
  0x83   : > { %1114 = vmatpush.msrb.mxu2 %v796_v14  ;;  %v745_v14 = vld [vmem:[%s2916_s3] sm:$0xff]  ;;  %1066 = vmatpush.msrb.mxu3 %v902_v13  ;;  %v836_v13 = vld [vmem:[#allocation6 + $0x1c0] sm:$0xff] }
  0x84   : > { %1047 = vmatpush.msrb.mxu0 %v862_v47 }
  0x85   : > { %1115 = vmatpush.msrb.mxu2 %v794_v17  ;;  %v844_v17 = vld [vmem:[#allocation6 + $0x200] sm:$0xff]  ;;  %1067 = vmatpush.msrb.mxu3 %v900_v18  ;;  %v835_v18 = vld [vmem:[#allocation6 + $0x1b8] sm:$0xff] }
  0x86   : > { %1048 = vmatpush.msrb.mxu0 %v860_v51 }
  0x87   : > { %1116 = vmatpush.msrb.mxu2 %v792_v20 }
  0x88   : > { %1165 = vmatpush.msra.mxu0 %v850_v63 }
  0x89   : > { %1117 = vmatpush.msrb.mxu2 %v790_v27 }
  0x8a   : > { %1166 = vmatpush.msra.mxu0 %v848_v4 }
  0x8b   : > { %1118 = vmatpush.msrb.mxu2 %v788_v31 }
  0x8c   : > { %1167 = vmatpush.msra.mxu0 %v846_v12  ;;  %v847_v12 = vld [vmem:[#allocation6 + $0x218] sm:$0xff] }
  0x8d   : > { %1119 = vmatpush.msrb.mxu2 %v786_v38 }
  0x8e   : > { %1168 = vmatpush.msra.mxu0 %v844_v17 }
  0x8f   : > { %1120 = vmatpush.msrb.mxu2 %v784_v44 }
  0x91   : > { %1121 = vmatpush.msrb.mxu2 %v782_v49 }
  0x93   : > { %1122 = vmatpush.msrb.mxu2 %v780_v53 }
  0xb1   : > { %v2401_v9 = vpop.f32.mrf.mxu0 }
  0xb2   : > { %v484_v34 = vpop.f32.mrf.mxu1 }
  0xb8   : > { %v2403_v21 = vpop.f32.mrf.mxu2 }
  0xb9   : > { %v2405_v22 = vpop.f32.mrf.mxu3  ;;  %v2407_v25 = vpop.f32.mrf.mxu0 }
  0xba   : > { %v487_v55 = vpop.f32.mrf.mxu1  ;;  %v546_v1 = vadd.f32 %v2405_v22, %v2401_v9  ;;  %v746_v9 = vld [vmem:[%s2916_s3 + $0x8] sm:$0xff]  ;;  %v898_v22 = vld [vmem:[#allocation6 + $0x378] sm:$0xff] }
  0xbb   : > { %1068 = vmatpush.msrb.mxu3 %v898_v22 }
  0xbd   : > { %1069 = vmatpush.msrb.mxu3 %v896_v28  ;;  %v830_v28 = vld [vmem:[#allocation6 + $0x190] sm:$0xff] }
  0xbf   : > { %1070 = vmatpush.msrb.mxu3 %v894_v32  ;;  %v828_v32 = vld [vmem:[#allocation6 + $0x180] sm:$0xff] }
  0xc0   : > { %v2409_v41 = vpop.f32.mrf.mxu2 }
  0xc1   : > { %v2411_v42 = vpop.f32.mrf.mxu3  ;;  %v2413_v45 = vpop.f32.mrf.mxu0  ;;  %1071 = vmatpush.msrb.mxu3 %v892_v37 }
  0xc2   : > { %v490_v2 = vpop.f32.mrf.mxu1  ;;  %v549_v23 = vadd.f32 %v2411_v42, %v2407_v25  ;;  %v749_v25 = vld [vmem:[%s2916_s3 + $0x20] sm:$0xff] }
  0xc8   : > { %v2415_v57 = vpop.f32.mrf.mxu2 }
  0xc9   : > { %v2417_v58 = vpop.f32.mrf.mxu3 }
  0xca   : > { %v552_v40 = vadd.f32 %v2417_v58, %v2413_v45  ;;  %v851_v58 = vld [vmem:[#allocation6 + $0x238] sm:$0xff] }
  0xcb   : > { %v571_v60 = vpop.f32.mrf.mxu0 }
  0xcc   : > { %v572_v3 = vadd.f32 %v571_v60, %v484_v34  ;;  %v597_v33 = vpop.f32.mrf.mxu1  ;;  %v748_v34 = vld [vmem:[%s2916_s3 + $0x18] sm:$0xff] }
  0xcd   : > { %v598_v53 = vadd.f32 %v597_v33, %v2403_v21  ;;  %v752_v60 = vld [vmem:[%s2916_s3 + $0x38] sm:$0x3] }
  0xd2   : > { %v666_v5 = vpop.f32.mrf.mxu2 }
  0xd3   : > { %v692_v6 = vpop.f32.mrf.mxu3  ;;  %v727_v8 = vadd.f32 %v666_v5, %v546_v1  ;;  %v574_v11 = vpop.f32.mrf.mxu0  ;;  %v747_v5 = vld [vmem:[%s2916_s3 + $0x10] sm:$0xff] }
  0xd4   : > { %v728_v10 = vadd.f32 %v692_v6, %v572_v3  ;;  %v575_v24 = vadd.f32 %v574_v11, %v487_v55  ;;  %v849_v3 = vld [vmem:[#allocation6 + $0x228] sm:$0xff]  ;;  %v600_v4 = vpop.f32.mrf.mxu1  ;;  %v838_v6 = vld [vmem:[#allocation6 + $0x1d0] sm:$0xff]  ;;  %v839_v11 = vld [vmem:[#allocation6 + $0x1d8] sm:$0xff] }
  0xd5   : > { %v736_v15 = vmax.f32 %v727_v8, 0.0  ;;  %v601_v17 = vadd.f32 %v600_v4, %v2409_v41  ;;  %v831_v41 = vld [vmem:[#allocation6 + $0x198] sm:$0xff] }
  0xd6   : > { %v737_v16 = vmax.f32 %v728_v10, 0.0  ;;  %v819_v4 = vld [vmem:[#allocation6 + $0x138] sm:$0xff] }
  0xd7   : > { %v2427_v19 = vmul.f32 %v745_v14, %v736_v15  ;;  %v845_v15 = vld [vmem:[#allocation6 + $0x208] sm:$0xff] }
  0xd8   : > { %v2429_v20 = vmul.f32 %v746_v9, %v737_v16  ;;  %v837_v9 = vld [vmem:[#allocation6 + $0x1c8] sm:$0xff]  ;;  %v834_v16 = vld [vmem:[#allocation6 + $0x1b0] sm:$0xff] }
  0xd9   : > { %763 = vst [vmem:[#allocation2] sm:$0xff] %v2427_v19 }
  0xda   : > { %764 = vst [vmem:[#allocation2 + $0x8] sm:$0xff] %v2429_v20  ;;  %v669_v26 = vpop.f32.mrf.mxu2 }
  0xdb   : > { %v695_v27 = vpop.f32.mrf.mxu3  ;;  %v730_v29 = vadd.f32 %v669_v26, %v549_v23  ;;  %v577_v31 = vpop.f32.mrf.mxu0  ;;  %v832_v23 = vld [vmem:[#allocation6 + $0x1a0] sm:$0xff]  ;;  %v833_v26 = vld [vmem:[#allocation6 + $0x1a8] sm:$0xff] }
  0xdc   : > { %v731_v30 = vadd.f32 %v695_v27, %v575_v24  ;;  %v578_v43 = vadd.f32 %v577_v31, %v490_v2  ;;  %v841_v2 = vld [vmem:[#allocation6 + $0x1e8] sm:$0xff]  ;;  %v750_v27 = vld [vmem:[%s2916_s3 + $0x28] sm:$0xff] }
  0xdd   : > { %v739_v35 = vmax.f32 %v730_v29, 0.0 }
  0xde   : > { %v740_v36 = vmax.f32 %v731_v30, 0.0  ;;  %v603_v30 = vpop.f32.mrf.mxu1 }
  0xdf   : > { %v2441_v38 = vmul.f32 %v748_v34, %v739_v35  ;;  %v604_v37 = vadd.f32 %v603_v30, %v2415_v57  ;;  %v827_v57 = vld [vmem:[#allocation6 + $0x178] sm:$0xff]  ;;  %v1282_v30 = vld [vmem:[#allocation6 + $0x570] sm:$0xff] }
  0xe0   : > { %v2443_v39 = vmul.f32 %v749_v25, %v740_v36  ;;  %v852_v42 = vld [vmem:[#allocation2] sm:$0xfe]  ;;  %v826_v36 = vld [vmem:[#allocation6 + $0x170] sm:$0xff] }
  0xe1   : > { %v941_v44 = vrot.slane %v852_v42, 1  ;;  %v942_v46 = vrot.slane %v2441_v38, 1  ;;  %v853_v47 = vld [vmem:[#allocation2 + $0x8] sm:$0xfe]  ;;  %v829_v42 = vld [vmem:[#allocation6 + $0x188] sm:$0xff] }
  0xe2   : > { %v945_v48 = vrot.slane %v2443_v39, 1  ;;  %v672_v49 = vpop.f32.mrf.mxu2  ;;  %v944_v51 = vrot.slane %v853_v47, 1  ;;  %v824_v47 = vld [vmem:[#allocation6 + $0x160] sm:$0xff] }
  0xe3   : > { %v698_v50 = vpop.f32.mrf.mxu3  ;;  %v733_v54 = vadd.f32 %v672_v49, %v552_v40  ;;  %v943_v45 = vsel %vm940_vm1, %v941_v44, %v942_v46 }
  0xe4   : > { %v734_v55 = vadd.f32 %v698_v50, %v578_v43  ;;  %v718_v61 = vpop.f32.mrf.mxu0  ;;  %980 = vmatmul.f32.vlgmr.msra.gmra.mxu1 %v943_v45  ;;  %v2462_v21 = vsel %vm940_vm1, %v944_v51, %v945_v48  ;;  %1049 = vmatmul.f32.vlgmr.msrb.gmra.mxu0 %v943_v45  ;;  %v822_v50 = vld [vmem:[#allocation6 + $0x150] sm:$0xff] }
  0xe5   : > { %v742_v63 = vmax.f32 %v733_v54, 0.0  ;;  %v729_v1 = vadd.f32 %v718_v61, %v598_v53  ;;  %1003 = vmatmul.f32.vlgmr.msra.gmra.mxu2 %v2462_v21  ;;  %1130 = vmatpush.msra.mxu1 %v842_v52  ;;  %v825_v52 = vld [vmem:[#allocation6 + $0x168] sm:$0xff]  ;;  %v820_v53 = vld [vmem:[#allocation6 + $0x140] sm:$0xff]  ;;  %v1314_v45 = vld [vmem:[#allocation6 + $0x670] sm:$0xff] }
  0xe6   : > { %v743_v0 = vmax.f32 %v734_v55, 0.0  ;;  %1199 = vmatpush.msra.mxu2 %v843_v56  ;;  %1234 = vmatpush.msrb.mxu0 %v851_v58  ;;  %v823_v55 = vld [vmem:[#allocation6 + $0x158] sm:$0xff] }
  0xe7   : > { %v2468_v7 = vmul.f32 %v751_v59, %v742_v63  ;;  %v738_v10 = vmax.f32 %v729_v1, 0.0  ;;  %1131 = vmatpush.msra.mxu1 %v840_v62  ;;  %v811_v61 = vld [vmem:[#allocation6 + $0xf8] sm:$0xff]  ;;  %v1312_v62 = vld [vmem:[#allocation6 + $0x660] sm:$0xff]  ;;  %v818_v1 = vld [vmem:[#allocation6 + $0x130] sm:$0xff] }
  0xe8   : > { %v2470_v8 = vmul.f32 %v752_v60, %v743_v0  ;;  %1200 = vmatpush.msra.mxu2 %v841_v2  ;;  %1235 = vmatpush.msrb.mxu0 %v849_v3  ;;  %v821_v0 = vld [vmem:[#allocation6 + $0x148] sm:$0xff]  ;;  %v1310_v3 = vld [vmem:[#allocation6 + $0x650] sm:$0xff] }
  0xe9   : > { %770 = vst [vmem:[#allocation2 + $0x30] sm:$0x3] %v2468_v7  ;;  %v2473_v14 = vmul.f32 %v747_v5, %v738_v10  ;;  %1132 = vmatpush.msra.mxu1 %v838_v6  ;;  %v809_v2 = vld [vmem:[#allocation6 + $0xe8] sm:$0xff]  ;;  %v816_v5 = vld [vmem:[#allocation6 + $0x120] sm:$0xff]  ;;  %v807_v6 = vld [vmem:[#allocation6 + $0xd8] sm:$0xff] }
  0xea   : > { %771 = vst [vmem:[#allocation2 + $0x38] sm:$0x3] %v2470_v8  ;;  %1201 = vmatpush.msra.mxu2 %v839_v11  ;;  %1236 = vmatpush.msrb.mxu0 %v847_v12  ;;  %v1308_v10 = vld [vmem:[#allocation6 + $0x640] sm:$0xff]  ;;  %v817_v11 = vld [vmem:[#allocation6 + $0x128] sm:$0xff] }
  0xeb   : > { %766 = vst.msk [vmem:[#allocation2 + $0x10] sm:$0xff] %vm765_vm2, %v2473_v14  ;;  %1133 = vmatpush.msra.mxu1 %v836_v13  ;;  %v805_v12 = vld [vmem:[#allocation6 + $0xc8] sm:$0xff] }
  0xec   : > { %v721_v22 = vpop.f32.mrf.mxu0  ;;  %1202 = vmatpush.msra.mxu2 %v837_v9  ;;  %1237 = vmatpush.msrb.mxu0 %v845_v15  ;;  %v1306_v9 = vld [vmem:[#allocation6 + $0x630] sm:$0xff] }
  0xed   : > { %v732_v24 = vadd.f32 %v721_v22, %v601_v17  ;;  %1134 = vmatpush.msra.mxu1 %v834_v16  ;;  %v803_v16 = vld [vmem:[#allocation6 + $0xb8] sm:$0xff]  ;;  %v814_v22 = vld [vmem:[#allocation6 + $0x110] sm:$0xff] }
  0xee   : > { %1203 = vmatpush.msra.mxu2 %v835_v18  ;;  %v1304_v18 = vld [vmem:[#allocation6 + $0x620] sm:$0xff] }
  0xef   : > { %v741_v29 = vmax.f32 %v732_v24, 0.0  ;;  %1135 = vmatpush.msra.mxu1 %v832_v23  ;;  %v801_v23 = vld [vmem:[#allocation6 + $0xa8] sm:$0xff]  ;;  %v815_v24 = vld [vmem:[#allocation6 + $0x118] sm:$0xff] }
  0xf0   : > { %v855_v31 = vld [vmem:[#allocation2 + $0x30] sm:$0x1]  ;;  %1204 = vmatpush.msra.mxu2 %v833_v26  ;;  %v1302_v26 = vld [vmem:[#allocation6 + $0x610] sm:$0xff] }
  0xf1   : > { %v2482_v33 = vmul.f32 %v750_v27, %v741_v29  ;;  %v950_v34 = vrot.slane %v855_v31, 1  ;;  %v856_v25 = vld [vmem:[#allocation2 + $0x38] sm:$0x1]  ;;  %1136 = vmatpush.msra.mxu1 %v830_v28  ;;  %v799_v28 = vld [vmem:[#allocation6 + $0x98] sm:$0xff]  ;;  %v813_v29 = vld [vmem:[#allocation6 + $0x108] sm:$0xff] }
  0xf2   : > { %v952_v35 = vrot.slane %v856_v25, 1  ;;  %1205 = vmatpush.msra.mxu2 %v831_v41  ;;  %v2504_v58 = vld [vmem:[#allocation2 + $0x10] sm:$0xff]  ;;  %v812_v27 = vld [vmem:[#allocation6 + $0x100] sm:$0xff] }
  0xf3   : > { %769 = vst.msk [vmem:[#allocation2 + $0x28] sm:$0xff] %vm765_vm2, %v2482_v33  ;;  %v951_v40 = vsel %vm940_vm1, %v942_v46, %v950_v34  ;;  %1137 = vmatpush.msra.mxu1 %v828_v32  ;;  %v753_v46 = vld [vmem:[%s2916_s3 + $0x40] sm:$0x3]  ;;  %v1300_v41 = vld [vmem:[#allocation6 + $0x600] sm:$0xff]  ;;  %v1283_v31 = vld [vmem:[#allocation6 + $0x578] sm:$0xff] }
  0xf4   : > { %v724_v43 = vpop.f32.mrf.mxu0  ;;  %983 = vmatmul.f32.gmra.mxu1 %v951_v40  ;;  %v2493_v44 = vsel %vm940_vm1, %v945_v48, %v952_v35  ;;  %1052 = vmatmul.f32.gmra.mxu0 %v951_v40  ;;  %v854_v48 = vld [vmem:[#allocation2 + $0x10] sm:$0xfe]  ;;  %v797_v32 = vld [vmem:[#allocation6 + $0x88] sm:$0xff]  ;;  %v1298_v34 = vld [vmem:[#allocation6 + $0x5f0] sm:$0xff] }
  0xf5   : > { %v735_v49 = vadd.f32 %v724_v43, %v604_v37  ;;  %1006 = vmatmul.f32.gmra.mxu2 %v2493_v44  ;;  %1138 = vmatpush.msra.mxu1 %v826_v36  ;;  %v947_v59 = vrot.slane %v854_v48, 1  ;;  %v1280_v25 = vld [vmem:[#allocation6 + $0x560] sm:$0xff]  ;;  %v1281_v35 = vld [vmem:[#allocation6 + $0x568] sm:$0xff]  ;;  %v795_v36 = vld [vmem:[#allocation6 + $0x78] sm:$0xff] }
  0xf6   : > { %1206 = vmatpush.msra.mxu2 %v829_v42  ;;  %v1296_v37 = vld [vmem:[#allocation6 + $0x5e0] sm:$0xff]  ;;  %v1278_v40 = vld [vmem:[#allocation6 + $0x550] sm:$0xff]  ;;  %v1279_v42 = vld [vmem:[#allocation6 + $0x558] sm:$0xff] }
  0xf7   : > { %v744_v51 = vmax.f32 %v735_v49, 0.0  ;;  %1139 = vmatpush.msra.mxu1 %v824_v47  ;;  %v793_v43 = vld [vmem:[#allocation6 + $0x68] sm:$0xff]  ;;  %v1294_v47 = vld [vmem:[#allocation6 + $0x5d0] sm:$0xff]  ;;  %v1276_v49 = vld [vmem:[#allocation6 + $0x540] sm:$0xff] }
  0xf8   : > { %1207 = vmatpush.msra.mxu2 %v827_v57  ;;  %v1277_v57 = vld [vmem:[#allocation6 + $0x548] sm:$0xff] }
  0xf9   : > { %v2499_v54 = vmul.f32 %v753_v46, %v744_v51  ;;  %1140 = vmatpush.msra.mxu1 %v822_v50  ;;  %v791_v46 = vld [vmem:[#allocation6 + $0x58] sm:$0xff]  ;;  %v1292_v50 = vld [vmem:[#allocation6 + $0x5c0] sm:$0xff]  ;;  %v1274_v51 = vld [vmem:[#allocation6 + $0x530] sm:$0xff] }
  0xfa   : > { %v2501_v56 = vld [vmem:[#allocation2 + $0x28] sm:$0xff]  ;;  %1208 = vmatpush.msra.mxu2 %v825_v52  ;;  %v1275_v52 = vld [vmem:[#allocation6 + $0x538] sm:$0xff]  ;;  %v789_v48 = vld [vmem:[#allocation6 + $0x48] sm:$0xff] }
  0xfb   : > { %773 = vst.msk [vmem:[#allocation2 + $0x40] sm:$0x3] %vm772_vm3, %v2499_v54  ;;  %v948_v60 = vrot.slane %v2501_v56, 1  ;;  %1141 = vmatpush.msra.mxu1 %v820_v53  ;;  %v1272_v53 = vld [vmem:[#allocation6 + $0x520] sm:$0xff] }
  0xfc   : > { %1990 = vmatmul.msk.f32.vlgmr.msra.gmra.mxu0 %vm765_vm2, %v2504_v58  ;;  %1209 = vmatpush.msra.mxu2 %v823_v55  ;;  %v1273_v55 = vld [vmem:[#allocation6 + $0x528] sm:$0xff] }
  0xfd   : > { %1123 = vmatmul.f32.vlgmr.msrb.gmra.mxu2 %v2427_v19  ;;  %1377 = vmatpush.msra.mxu0 %v1314_v45  ;;  %v949_v63 = vsel %vm940_vm1, %v947_v59, %v948_v60  ;;  %v787_v45 = vld [vmem:[#allocation6 + $0x38] sm:$0xff]  ;;  %v1270_v59 = vld [vmem:[#allocation6 + $0x510] sm:$0xff] }
  0xfe   : > { %1986 = vmatmul.msk.f32.vlgmr.msra.gmra.mxu3 %vm765_vm2, %v949_v63  ;;  %1988 = vmatmul.msk.f32.vlgmr.msrb.gmra.mxu1 %vm765_vm2, %v949_v63  ;;  %v1286_v63 = vld [vmem:[#allocation6 + $0x590] sm:$0xff] }
  0xff   : > { %1176 = vmatpush.msra.mxu3 %v811_v61  ;;  %1378 = vmatpush.msra.mxu0 %v1312_v62  ;;  %v785_v61 = vld [vmem:[#allocation6 + $0x28] sm:$0xff]  ;;  %v1246_v62 = vld [vmem:[#allocation2 + $0x8] sm:$0xfc] }
 0x100   : > { %1210 = vmatpush.msra.mxu2 %v821_v0  ;;  %1142 = vmatpush.msra.mxu1 %v818_v1  ;;  %v1268_v0 = vld [vmem:[#allocation6 + $0x500] sm:$0xff]  ;;  %v1269_v1 = vld [vmem:[#allocation6 + $0x508] sm:$0xff] }
 0x101   : > { %1177 = vmatpush.msra.mxu3 %v809_v2  ;;  %1379 = vmatpush.msra.mxu0 %v1310_v3  ;;  %v783_v2 = vld [vmem:[#allocation6 + $0x18] sm:$0xff]  ;;  %v1284_v3 = vld [vmem:[#allocation6 + $0x580] sm:$0xff] }
 0x102   : > { %1211 = vmatpush.msra.mxu2 %v819_v4  ;;  %v857_v13 = vld [vmem:[#allocation2 + $0x40] sm:$0x1]  ;;  %1143 = vmatpush.msra.mxu1 %v816_v5  ;;  %v1266_v4 = vld [vmem:[#allocation6 + $0x4f0] sm:$0xff]  ;;  %v1334_v5 = vrot.slane %v1246_v62, 2  ;;  %v1295_v62 = vld [vmem:[#allocation6 + $0x5d8] sm:$0xff] }
 0x103   : > { %1178 = vmatpush.msra.mxu3 %v807_v6  ;;  %1380 = vmatpush.msra.mxu0 %v1308_v10  ;;  %v954_v15 = vrot.slane %v857_v13, 1  ;;  %v1335_v6 = vrot.slane %v2443_v39, 2  ;;  %v781_v10 = vld [vmem:[#allocation6 + $0x8] sm:$0xff] }
 0x104   : > { %1991 = vmatmul.msk.f32.gmra.mxu0 %vm765_vm2, %v2501_v56  ;;  %1212 = vmatpush.msra.mxu2 %v817_v11  ;;  %v1264_v11 = vld [vmem:[#allocation6 + $0x4e0] sm:$0xff] }
 0x105   : > { %1126 = vmatmul.f32.gmra.mxu2 %v2441_v38  ;;  %1179 = vmatpush.msra.mxu3 %v805_v12  ;;  %v955_v17 = vsel %vm940_vm1, %v948_v60, %v954_v15  ;;  %v1271_v60 = vld [vmem:[#allocation6 + $0x518] sm:$0xff]  ;;  %v1322_v12 = vld [vmem:[#allocation6 + $0x6b0] sm:$0xff]  ;;  %v2533_v13 = vsel %vm1330_vm5, %v1334_v5, %v1335_v6 }
 0x106   : > { %1381 = vmatpush.msra.mxu0 %v1306_v9  ;;  %1987 = vmatmul.msk.f32.gmra.mxu3 %vm765_vm2, %v955_v17  ;;  %v1265_v9 = vld [vmem:[#allocation6 + $0x4e8] sm:$0xff]  ;;  %v1262_v15 = vld [vmem:[#allocation6 + $0x4d0] sm:$0xff] }
 0x107   : > { %1989 = vmatmul.msk.f32.gmra.mxu1 %vm765_vm2, %v955_v17  ;;  %1180 = vmatpush.msra.mxu3 %v803_v16  ;;  %v1320_v16 = vld [vmem:[#allocation6 + $0x6a0] sm:$0xff]  ;;  %v1263_v17 = vld [vmem:[#allocation6 + $0x4d8] sm:$0xff] }
 0x108   : > { %1382 = vmatpush.msra.mxu0 %v1304_v18  ;;  %1144 = vmatpush.msra.mxu1 %v814_v22  ;;  %v1249_v18 = vld [vmem:[#allocation2 + $0x38] sm:$0x3] }
 0x109   : > { %1181 = vmatpush.msra.mxu3 %v801_v23  ;;  %1213 = vmatpush.msra.mxu2 %v815_v24  ;;  %v1260_v22 = vld [vmem:[#allocation6 + $0x4c0] sm:$0xff]  ;;  %v1261_v23 = vld [vmem:[#allocation6 + $0x4c8] sm:$0xff]  ;;  %v1258_v24 = vld [vmem:[#allocation6 + $0x4b0] sm:$0xff] }
 0x10a   : > { %1383 = vmatpush.msra.mxu0 %v1302_v26  ;;  %1145 = vmatpush.msra.mxu1 %v812_v27  ;;  %v1342_v26 = vrot.slane %v1249_v18, 2  ;;  %v1316_v27 = vld [vmem:[#allocation6 + $0x680] sm:$0xff] }
 0x10b   : > { %1182 = vmatpush.msra.mxu3 %v799_v28  ;;  %1214 = vmatpush.msra.mxu2 %v813_v29  ;;  %v1259_v28 = vld [vmem:[#allocation6 + $0x4b8] sm:$0xff] }
 0x10c   : > { %1384 = vmatpush.msra.mxu0 %v1300_v41  ;;  %1354 = vmatpush.msrb.mxu1 %v1282_v30  ;;  %v1315_v29 = vld [vmem:[#allocation6 + $0x678] sm:$0xff]  ;;  %v2543_v41 = vsel %vm1330_vm5, %v1335_v6, %v1342_v26  ;;  %v1256_v30 = vld [vmem:[#allocation6 + $0x4a0] sm:$0xff] }
 0x10d   : > { %1423 = vmatpush.msrb.mxu2 %v1283_v31  ;;  %1183 = vmatpush.msra.mxu3 %v797_v32  ;;  %v1257_v31 = vld [vmem:[#allocation6 + $0x4a8] sm:$0xff] }
 0x10e   : > { %1215 = vmatmul.f32.vlgmr.msra.gmra.mxu2 %v2429_v20  ;;  %1992 = vmatmul.msk.f32.vlgmr.msrb.gmra.mxu0 %vm765_vm2, %v2504_v58  ;;  %v1288_v58 = vld [vmem:[#allocation6 + $0x5a0] sm:$0xff]  ;;  %v1245_v32 = vld [vmem:[#allocation2] sm:$0xfc] }
 0x10f   : > { %1385 = vmatpush.msra.mxu0 %v1298_v34  ;;  %1355 = vmatpush.msrb.mxu1 %v1280_v25  ;;  %v1255_v34 = vld [vmem:[#allocation6 + $0x498] sm:$0xff]  ;;  %v1331_v25 = vrot.slane %v1245_v32, 2 }
 0x110   : > { %1424 = vmatpush.msrb.mxu2 %v1281_v35  ;;  %1072 = vmatmul.f32.vlgmr.msrb.gmra.mxu3 %v2462_v21  ;;  %v1290_v21 = vld [vmem:[#allocation6 + $0x5b0] sm:$0xff]  ;;  %v1311_v35 = vld [vmem:[#allocation6 + $0x658] sm:$0xff] }
 0x111   : > { %1146 = vmatmul.f32.vlgmr.msra.gmra.mxu1 %v2429_v20  ;;  %1184 = vmatpush.msra.mxu3 %v795_v36  ;;  %v1252_v36 = vld [vmem:[#allocation6 + $0x480] sm:$0xff] }
 0x112   : > { %1386 = vmatpush.msra.mxu0 %v1296_v37  ;;  %1356 = vmatpush.msrb.mxu1 %v1278_v40  ;;  %v1253_v37 = vld [vmem:[#allocation6 + $0x488] sm:$0xff] }
 0x113   : > { %1425 = vmatpush.msrb.mxu2 %v1279_v42  ;;  %1185 = vmatpush.msra.mxu3 %v793_v43  ;;  %v1309_v40 = vld [vmem:[#allocation6 + $0x648] sm:$0xff]  ;;  %v1247_v42 = vld [vmem:[#allocation2 + $0x10] sm:$0xfc] }
 0x114   : > { %1387 = vmatpush.msra.mxu0 %v1294_v47  ;;  %1357 = vmatpush.msrb.mxu1 %v1276_v49  ;;  %v1323_v43 = vld [vmem:[#allocation6 + $0x6b8] sm:$0xff]  ;;  %v1338_v47 = vrot.slane %v2501_v56, 2 }
 0x115   : > { %1426 = vmatpush.msrb.mxu2 %v1277_v57  ;;  %1186 = vmatpush.msra.mxu3 %v791_v46  ;;  %v1307_v49 = vld [vmem:[#allocation6 + $0x638] sm:$0xff]  ;;  %v1337_v57 = vrot.slane %v1247_v42, 2 }
 0x116   : > { %1388 = vmatpush.msra.mxu0 %v1292_v50  ;;  %1358 = vmatpush.msrb.mxu1 %v1274_v51  ;;  %v1248_v46 = vld [vmem:[#allocation2 + $0x30] sm:$0x3]  ;;  %v1305_v50 = vld [vmem:[#allocation6 + $0x628] sm:$0xff] }
 0x117   : > { %1427 = vmatpush.msrb.mxu2 %v1275_v52  ;;  %1187 = vmatpush.msra.mxu3 %v789_v48  ;;  %v1339_v51 = vsel %vm1330_vm5, %v1337_v57, %v1338_v47  ;;  %v1319_v52 = vld [vmem:[#allocation6 + $0x698] sm:$0xff] }
 0x118   : > { %1218 = vmatmul.f32.gmra.mxu2 %v2443_v39  ;;  %1993 = vmatmul.msk.f32.gmra.mxu0 %vm765_vm2, %v2501_v56  ;;  %v1303_v48 = vld [vmem:[#allocation6 + $0x618] sm:$0xff]  ;;  %v1317_v56 = vld [vmem:[#allocation6 + $0x688] sm:$0xff] }
 0x119   : > { %1389 = vmatpush.msra.mxu0 %v1290_v21  ;;  %1359 = vmatpush.msrb.mxu1 %v1272_v53  ;;  %v1340_v21 = vrot.slane %v1248_v46, 2  ;;  %v1250_v53 = vld [vmem:[#allocation2 + $0x40] sm:$0x3]  ;;  %v1632_v46 = vld [vmem:[%s2917_s4 + $0x78] sm:$0xff] }
 0x11a   : > { %1428 = vmatpush.msrb.mxu2 %v1273_v55  ;;  %1075 = vmatmul.f32.gmra.mxu3 %v2493_v44  ;;  %v1267_v44 = vld [vmem:[#allocation6 + $0x4f8] sm:$0xff]  ;;  %v1301_v55 = vld [vmem:[#allocation6 + $0x608] sm:$0xff] }
 0x11b   : > { %1149 = vmatmul.f32.gmra.mxu1 %v2443_v39  ;;  %1188 = vmatpush.msra.mxu3 %v787_v45 }
 0x11c   : > { %1390 = vmatpush.msra.mxu0 %v1288_v58  ;;  %1360 = vmatpush.msrb.mxu1 %v1270_v59  ;;  %v1344_v58 = vrot.slane %v1250_v53, 2  ;;  %v1299_v59 = vld [vmem:[#allocation6 + $0x5f8] sm:$0xff]  ;;  %v1629_v53 = vld [vmem:[%s2917_s4 + $0x60] sm:$0xff] }
 0x11d   : > { %1429 = vmatpush.msrb.mxu2 %v1271_v60  ;;  %1189 = vmatpush.msra.mxu3 %v785_v61  ;;  %v1297_v60 = vld [vmem:[#allocation6 + $0x5e8] sm:$0xff] }
 0x11e   : > { %1391 = vmatpush.msra.mxu0 %v1286_v63  ;;  %1361 = vmatpush.msrb.mxu1 %v1268_v0  ;;  %v1345_v61 = vsel %vm1330_vm5, %v1338_v47, %v1344_v58  ;;  %v1293_v63 = vld [vmem:[#allocation6 + $0x5c8] sm:$0xff]  ;;  %v1291_v0 = vld [vmem:[#allocation6 + $0x5b8] sm:$0xff] }
 0x11f   : > { %1430 = vmatpush.msrb.mxu2 %v1269_v1  ;;  %1190 = vmatpush.msra.mxu3 %v783_v2  ;;  %v1287_v1 = vld [vmem:[#allocation6 + $0x598] sm:$0xff] }
 0x120   : > { %1392 = vmatpush.msra.mxu0 %v1284_v3  ;;  %1362 = vmatpush.msrb.mxu1 %v1266_v4  ;;  %v1683_v58 = vld [vmem:[%s2918_s5 + $0xf0] sm:$0xff] }
 0x121   : > { %1431 = vmatpush.msrb.mxu2 %v1267_v44  ;;  %1191 = vmatpush.msra.mxu3 %v781_v10 }
 0x122   : > { %1998 = vmatpush.msk.msrb.mxu0 %vm1504_vm4, %v2468_v7  ;;  %1363 = vmatpush.msrb.mxu1 %v1264_v11  ;;  %v1318_v7 = vld [vmem:[#allocation6 + $0x690] sm:$0xff] }
 0x123   : > { %1393 = vmatmul.f32.vlgmr.msra.gmra.mxu0 %v2533_v13  ;;  %1412 = vmatpush.msrb.mxu3 %v1322_v12 }
 0x124   : > { %1432 = vmatpush.msrb.mxu2 %v1265_v9  ;;  %1528 = vmatpush.msrb.mxu0 %v2441_v38 }
 0x125   : > { %1192 = vmatmul.f32.vlgmr.msra.gmra.mxu3 %v2427_v19  ;;  %1364 = vmatpush.msrb.mxu1 %v1262_v15 }
 0x126   : > { %1413 = vmatpush.msrb.mxu3 %v1320_v16  ;;  %1433 = vmatpush.msrb.mxu2 %v1263_v17 }
 0x127   : > { %1529 = vmatpush.msrb.mxu0 %v2427_v19  ;;  %1365 = vmatpush.msrb.mxu1 %v1260_v22  ;;  %v1313_v19 = vld [vmem:[#allocation6 + $0x668] sm:$0xff] }
 0x128   : > { %1414 = vmatpush.msrb.mxu3 %v1318_v7  ;;  %1434 = vmatpush.msrb.mxu2 %v1261_v23 }
 0x129   : > { %2000 = vmatpush.msk.msra.mxu0 %vm1504_vm4, %v2470_v8  ;;  %1366 = vmatpush.msrb.mxu1 %v1258_v24  ;;  %v1254_v8 = vld [vmem:[#allocation6 + $0x490] sm:$0xff] }
 0x12a   : > { %1415 = vmatpush.msrb.mxu3 %v1316_v27  ;;  %1435 = vmatpush.msrb.mxu2 %v1259_v28 }
 0x12b   : > { %1548 = vmatpush.msra.mxu0 %v2443_v39  ;;  %1367 = vmatpush.msrb.mxu1 %v1256_v30  ;;  %v1332_v39 = vrot.slane %v2441_v38, 2 }
 0x12c   : > { %1396 = vmatmul.f32.gmra.mxu0 %v2543_v41  ;;  %1446 = vmatpush.msra.mxu3 %v1315_v29  ;;  %v2214_v29 = vmov 1.0  }
 0x12d   : > { %1549 = vmatpush.msra.mxu0 %v2429_v20  ;;  %1436 = vmatpush.msrb.mxu2 %v1257_v31  ;;  %v1333_v20 = vsel %vm1330_vm5, %v1331_v25, %v1332_v39  ;;  %v1341_v45 = vsel %vm1330_vm5, %v1332_v39, %v1340_v21  ;;  %v1630_v21 = vld [vmem:[%s2917_s4 + $0x68] sm:$0xff] }
 0x12e   : > { %1195 = vmatmul.f32.gmra.mxu3 %v2441_v38  ;;  %1368 = vmatpush.msrb.mxu1 %v1254_v8  ;;  %v1321_v38 = vld [vmem:[#allocation6 + $0x6a8] sm:$0xff] }
 0x12f   : > { %1447 = vmatpush.msra.mxu3 %v1313_v19  ;;  %1437 = vmatpush.msrb.mxu2 %v1255_v34 }
 0x130   : > { %1369 = vmatpush.msrb.mxu1 %v1252_v36 }
 0x131   : > { %1448 = vmatpush.msra.mxu3 %v1311_v35  ;;  %1438 = vmatpush.msrb.mxu2 %v1253_v37 }
 0x132   : > { %1370 = vmatmul.f32.vlgmr.msrb.gmra.mxu1 %v1333_v20  ;;  %1439 = vmatmul.f32.vlgmr.msrb.gmra.mxu2 %v1333_v20 }
 0x133   : > { %1449 = vmatpush.msra.mxu3 %v1309_v40  ;;  %1481 = vmatpush.msra.mxu1 %v1323_v43 }
 0x134   : > { %1999 = vmatmul.msk.f32.vlgmr.msrb.gmra.mxu0 %vm1500_vm6, %v2214_v29  ;;  %1728 = vmatpush.msra.mxu2 %v1632_v46  ;;  %v1645_v46 = vld [vmem:[%s2917_s4 + $0xe0] sm:$0xff] }
 0x135   : > { %1450 = vmatpush.msra.mxu3 %v1307_v49  ;;  %1482 = vmatpush.msra.mxu1 %v1321_v38 }
 0x136   : > { %1994 = vmatmul.msk.f32.vlgmr.msrb.gmra.mxu3 %vm765_vm2, %v1339_v51 }
 0x137   : > { %1451 = vmatpush.msra.mxu3 %v1305_v50  ;;  %1483 = vmatpush.msra.mxu1 %v1319_v52  ;;  %v1631_v50 = vld [vmem:[%s2917_s4 + $0x70] sm:$0xff] }
 0x138   : > { %1729 = vmatpush.msra.mxu2 %v1631_v50  ;;  %v1644_v50 = vld [vmem:[%s2917_s4 + $0xd8] sm:$0xff] }
 0x139   : > { %1452 = vmatpush.msra.mxu3 %v1303_v48  ;;  %1484 = vmatpush.msra.mxu1 %v1317_v56 }
 0x13a   : > { %1442 = vmatmul.f32.gmra.mxu2 %v1341_v45  ;;  %1373 = vmatmul.f32.gmra.mxu1 %v1341_v45 }
 0x13b   : > { %2002 = vmatpush.msk.msrb.mxu1 %vm1504_vm4, %v2499_v54  ;;  %1453 = vmatpush.msra.mxu3 %v1301_v55  ;;  %v1289_v54 = vld [vmem:[#allocation6 + $0x5a8] sm:$0xff]  ;;  %v1684_v55 = vld [vmem:[%s2918_s5 + $0xf8] sm:$0xff] }
 0x13c   : > { %2001 = vmatmul.msk.f32.vlgmr.msra.gmra.mxu0 %vm1500_vm6, %v2214_v29  ;;  %1730 = vmatpush.msra.mxu2 %v1630_v21  ;;  %v1657_v21 = vld [vmem:[%s2918_s5 + $0x20] sm:$0xff] }
 0x13d   : > { %1568 = vmatpush.msrb.mxu1 %v2482_v33  ;;  %1454 = vmatpush.msra.mxu3 %v1299_v59  ;;  %v1285_v33 = vld [vmem:[#allocation6 + $0x588] sm:$0xff]  ;;  %v1668_v59 = vld [vmem:[%s2918_s5 + $0x78] sm:$0xff] }
 0x13e   : > { %1995 = vmatmul.msk.f32.gmra.mxu3 %vm765_vm2, %v1345_v61  ;;  %1731 = vmatpush.msra.mxu2 %v1629_v53  ;;  %v1619_v53 = vld [vmem:[%s2917_s4 + $0x10] sm:$0xff] }
 0x13f   : > { %1569 = vmatpush.msrb.mxu1 %v2473_v14  ;;  %1455 = vmatpush.msra.mxu3 %v1297_v60  ;;  %v1628_v60 = vld [vmem:[%s2917_s4 + $0x58] sm:$0xff] }
 0x140   : > { %1732 = vmatpush.msra.mxu2 %v1628_v60  ;;  %v1638_v60 = vld [vmem:[%s2917_s4 + $0xa8] sm:$0xff] }
 0x141   : > { %1456 = vmatpush.msra.mxu3 %v1295_v62  ;;  %v1667_v62 = vld [vmem:[%s2918_s5 + $0x70] sm:$0xff] }
 0x142   : > { %1996 = vmatmul.msk.f32.vlgmr.msra.gmra.mxu1 %vm765_vm2, %v1339_v51 }
 0x143   : > { %1457 = vmatpush.msra.mxu3 %v1293_v63  ;;  %1705 = vmatpush.msra.mxu1 %v1684_v55  ;;  %v1627_v63 = vld [vmem:[%s2917_s4 + $0x50] sm:$0xff] }
 0x144   : > { %1733 = vmatpush.msra.mxu2 %v1627_v63  ;;  %v1639_v55 = vld [vmem:[%s2917_s4 + $0xb0] sm:$0xff]  ;;  %v1617_v63 = vld [vmem:[%s2917_s4] sm:$0xff] }
 0x145   : > { %1458 = vmatpush.msra.mxu3 %v1291_v0  ;;  %1706 = vmatpush.msra.mxu1 %v1683_v58  ;;  %v1676_v58 = vld [vmem:[%s2918_s5 + $0xb8] sm:$0xff] }
 0x147   : > { %1459 = vmatpush.msra.mxu3 %v1289_v54 }
 0x149   : > { %1460 = vmatpush.msra.mxu3 %v1287_v1  ;;  %v1681_v1 = vld [vmem:[%s2918_s5 + $0xe0] sm:$0xff] }
 0x14a   : > { %1997 = vmatmul.msk.f32.gmra.mxu1 %vm765_vm2, %v1345_v61  ;;  %v1682_v61 = vld [vmem:[%s2918_s5 + $0xe8] sm:$0xff] }
 0x14b   : > { %1461 = vmatpush.msra.mxu3 %v1285_v33  ;;  %1707 = vmatpush.msra.mxu1 %v1682_v61  ;;  %v1655_v61 = vld [vmem:[%s2918_s5 + $0x10] sm:$0xff] }
 0x14c   : > { %1462 = vmatmul.f32.vlgmr.msra.gmra.mxu3 %v2533_v13 }
 0x14d   : > { %1708 = vmatpush.msra.mxu1 %v1681_v1  ;;  %v1674_v1 = vld [vmem:[%s2918_s5 + $0xa8] sm:$0xff] }
 0x152   : > { %2003 = vmatmul.msk.f32.vlgmr.msrb.gmra.mxu1 %vm1500_vm6, %v2214_v29 }
 0x154   : > { %1465 = vmatmul.f32.gmra.mxu3 %v2543_v41 }
 0x161   : > { %v2564_v14 = vpop.f32.mrf.mxu0  ;;  %v981_v2 = vpop.f32.mrf.mxu1 }
 0x168   : > { %v1004_v12 = vpop.f32.mrf.mxu2 }
 0x169   : > { %v1005_v30 = vadd.f32 %v1004_v12, %v981_v2  ;;  %v1666_v2 = vld [vmem:[%s2918_s5 + $0x68] sm:$0xff] }
 0x171   : > { %v2566_v4 = vpop.f32.mrf.mxu0  ;;  %v984_v5 = vpop.f32.mrf.mxu1 }
 0x178   : > { %v1007_v13 = vpop.f32.mrf.mxu2 }
 0x179   : > { %v1170_v44 = vpop.f32.mrf.mxu0  ;;  %v1008_v31 = vadd.f32 %v1007_v13, %v984_v5  ;;  %v1664_v13 = vld [vmem:[%s2918_s5 + $0x58] sm:$0xff] }
 0x17b   : > { %v2568_v10 = vpop.f32.mrf.mxu1 }
 0x180   : > { %v1124_v22 = vpop.f32.mrf.mxu2 }
 0x181   : > { %v1027_v3 = vpop.f32.mrf.mxu3  ;;  %v1173_v9 = vpop.f32.mrf.mxu0 }
 0x182   : > { %v1028_v32 = vadd.f32 %v1027_v3, %v1005_v30  ;;  %v1626_v3 = vld [vmem:[%s2917_s4 + $0x48] sm:$0xff] }
 0x183   : > { %1734 = vmatpush.msra.mxu2 %v1626_v3  ;;  %v1673_v3 = vld [vmem:[%s2918_s5 + $0xa0] sm:$0xff] }
 0x184   : > { %v2572_v15 = vpop.f32.mrf.mxu1  ;;  %v1125_v25 = vadd.f32 %v1124_v22, %v1028_v32  ;;  %v1663_v22 = vld [vmem:[%s2918_s5 + $0x50] sm:$0xff]  ;;  %v1661_v32 = vld [vmem:[%s2918_s5 + $0x40] sm:$0xff] }
 0x188   : > { %v1127_v27 = vpop.f32.mrf.mxu2 }
 0x189   : > { %v1030_v6 = vpop.f32.mrf.mxu3 }
 0x18a   : > { %v1031_v19 = vadd.f32 %v1030_v6, %v1008_v31  ;;  %v1665_v6 = vld [vmem:[%s2918_s5 + $0x60] sm:$0xff] }
 0x18b   : > { %v2574_v17 = vpop.f32.mrf.mxu0 }
 0x18c   : > { %v1128_v39 = vadd.f32 %v1127_v27, %v1031_v19  ;;  %v1621_v19 = vld [vmem:[%s2917_s4 + $0x20] sm:$0xff] }
 0x18e   : > { %v1147_v18 = vpop.f32.mrf.mxu1 }
 0x18f   : > { %v1148_v36 = vadd.f32 %v1147_v18, %v1125_v25 }
 0x191   : > { %v2584_v34 = vpop.f32.mrf.mxu2  ;;  %v1171_v49 = vadd.f32 %v1170_v44, %v1148_v36  ;;  %v1625_v44 = vld [vmem:[%s2917_s4 + $0x40] sm:$0xff] }
 0x192   : > { %1735 = vmatpush.msra.mxu2 %v1625_v44  ;;  %v1634_v44 = vld [vmem:[%s2917_s4 + $0x88] sm:$0xff] }
 0x193   : > { %v2570_v11 = vpop.f32.mrf.mxu3 }
 0x194   : > { %v1074_v0 = vadd.f32 %v2570_v11, %v2564_v14  ;;  %v1680_v14 = vld [vmem:[%s2918_s5 + $0xd8] sm:$0xff] }
 0x195   : > { %v2578_v23 = vpop.f32.mrf.mxu0  ;;  %1709 = vmatpush.msra.mxu1 %v1680_v14  ;;  %v1635_v14 = vld [vmem:[%s2917_s4 + $0x90] sm:$0xff] }
 0x196   : > { %v1097_v11 = vadd.f32 %v2568_v10, %v1074_v0  ;;  %v1637_v0 = vld [vmem:[%s2917_s4 + $0xa0] sm:$0xff] }
 0x198   : > { %v1150_v24 = vpop.f32.mrf.mxu1 }
 0x199   : > { %v1151_v37 = vadd.f32 %v1150_v24, %v1128_v39  ;;  %v1623_v24 = vld [vmem:[%s2917_s4 + $0x30] sm:$0xff] }
 0x19b   : > { %v1174_v38 = vadd.f32 %v1173_v9, %v1151_v37  ;;  %v1219_v48 = vpop.f32.mrf.mxu2  ;;  %v1679_v9 = vld [vmem:[%s2918_s5 + $0xd0] sm:$0xff] }
 0x19c   : > { %1710 = vmatpush.msra.mxu1 %v1679_v9  ;;  %v1633_v9 = vld [vmem:[%s2917_s4 + $0x80] sm:$0xff] }
 0x19d   : > { %v1076_v16 = vpop.f32.mrf.mxu3 }
 0x19e   : > { %v1077_v54 = vadd.f32 %v1076_v16, %v2566_v4  ;;  %v1624_v16 = vld [vmem:[%s2917_s4 + $0x38] sm:$0xff] }
 0x19f   : > { %1736 = vmatpush.msra.mxu2 %v1624_v16  ;;  %v1670_v16 = vld [vmem:[%s2918_s5 + $0x88] sm:$0xff] }
 0x1a0   : > { %v1394_v41 = vpop.f32.mrf.mxu0  ;;  %v1100_v12 = vadd.f32 %v2572_v15, %v1077_v54  ;;  %v1678_v15 = vld [vmem:[%s2918_s5 + $0xc8] sm:$0xff] }
 0x1a1   : > { %1711 = vmatpush.msra.mxu1 %v1678_v15  ;;  %1737 = vmatpush.msra.mxu2 %v1623_v24  ;;  %v1654_v54 = vld [vmem:[%s2918_s5 + $0x8] sm:$0xff]  ;;  %v1649_v15 = vld [vmem:[%s2917_s4 + $0x100] sm:$0xff] }
 0x1a8   : > { %v2576_v7 = vpop.f32.mrf.mxu3 }
 0x1a9   : > { %v1397_v42 = vpop.f32.mrf.mxu0  ;;  %v1194_v18 = vadd.f32 %v2576_v7, %v1097_v11  ;;  %v1662_v7 = vld [vmem:[%s2918_s5 + $0x48] sm:$0xff]  ;;  %v1671_v11 = vld [vmem:[%s2918_s5 + $0x90] sm:$0xff] }
 0x1af   : > { %v1371_v28 = vpop.f32.mrf.mxu1 }
 0x1b0   : > { %v1395_v40 = vadd.f32 %v1394_v41, %v1371_v28  ;;  %v1217_v28 = vadd.f32 %v2584_v34, %v1194_v18  ;;  %v1660_v34 = vld [vmem:[%s2918_s5 + $0x38] sm:$0xff] }
 0x1b1   : > { %v2580_v26 = vpop.f32.mrf.mxu3 }
 0x1b2   : > { %v1197_v10 = vadd.f32 %v2580_v26, %v1100_v12  ;;  %v1622_v26 = vld [vmem:[%s2917_s4 + $0x28] sm:$0xff]  ;;  %v1240_v36 = vadd.f32 %v2574_v17, %v1217_v28  ;;  %v1651_v12 = vld [vmem:[%s2917_s4 + $0x110] sm:$0xff] }
 0x1b3   : > { %1738 = vmatpush.msra.mxu2 %v1622_v26  ;;  %v1796_v26 = vld [vmem:[%s2920_s7 + $0x30] sm:$0xff]  ;;  %v1795_v28 = vld [vmem:[%s2920_s7 + $0x28] sm:$0xff] }
 0x1b4   : > { %v1220_v41 = vadd.f32 %v1219_v48, %v1197_v10  ;;  %v1640_v48 = vld [vmem:[%s2917_s4 + $0xb8] sm:$0xff]  ;;  %v1669_v10 = vld [vmem:[%s2918_s5 + $0x80] sm:$0xff] }
 0x1b5   : > { %v1440_v33 = vpop.f32.mrf.mxu2  ;;  %1739 = vmatpush.msra.mxu2 %v1621_v19  ;;  %v1790_v19 = vld [vmem:[%s2920_s7] sm:$0xff] }
 0x1b6   : > { %v1243_v37 = vadd.f32 %v2578_v23, %v1220_v41  ;;  %v1648_v23 = vld [vmem:[%s2917_s4 + $0xf8] sm:$0xff]  ;;  %v1794_v41 = vld [vmem:[%s2920_s7 + $0x20] sm:$0xff] }
 0x1b7   : > { %v1374_v35 = vpop.f32.mrf.mxu1 }
 0x1b8   : > { %v1398_v20 = vadd.f32 %v1397_v42, %v1374_v35  ;;  %v1620_v35 = vld [vmem:[%s2917_s4 + $0x18] sm:$0xff]  ;;  %v1659_v42 = vld [vmem:[%s2918_s5 + $0x30] sm:$0xff] }
 0x1b9   : > { %v1417_v8 = vpop.f32.mrf.mxu3  ;;  %1740 = vmatpush.msra.mxu2 %v1620_v35  ;;  %v1834_v35 = vld [vmem:[%s2921_s8 + $0x58] sm:$0xff] }
 0x1ba   : > { %v1418_v43 = vadd.f32 %v1417_v8, %v1395_v40 }
 0x1bb   : > { %1741 = vmatpush.msra.mxu2 %v1619_v53  ;;  %v1824_v53 = vld [vmem:[%s2921_s8 + $0x8] sm:$0xff] }
 0x1bc   : > { %v1492_v51 = vadd.f32 %v1418_v43, %v1171_v49 }
 0x1bd   : > { %v1443_v30 = vpop.f32.mrf.mxu2 }
 0x1be   : > { %v1496_v45 = vmax.f32 %v1492_v51, 0.0  ;;  %v1642_v51 = vld [vmem:[%s2917_s4 + $0xc8] sm:$0xff] }
 0x1bf   : > { %v1486_v4 = vpop.f32.mrf.mxu1 }
 0x1c1   : > { %v1420_v47 = vpop.f32.mrf.mxu3 }
 0x1c2   : > { %v1421_v57 = vadd.f32 %v1420_v47, %v1398_v20  ;;  %v1658_v47 = vld [vmem:[%s2918_s5 + $0x28] sm:$0xff] }
 0x1c4   : > { %v1494_v52 = vadd.f32 %v1421_v57, %v1174_v38  ;;  %v1647_v38 = vld [vmem:[%s2917_s4 + $0xf0] sm:$0xff]  ;;  %v1646_v57 = vld [vmem:[%s2917_s4 + $0xe8] sm:$0xff] }
 0x1c6   : > { %v1498_v56 = vmax.f32 %v1494_v52, 0.0  ;;  %v1641_v52 = vld [vmem:[%s2917_s4 + $0xc0] sm:$0xff] }
 0x1c7   : > { %v1489_v39 = vpop.f32.mrf.mxu1 }
 0x1c8   : > { %1591 = vmatpush.msrb.mxu3 %v1498_v56  ;;  %v1677_v56 = vld [vmem:[%s2918_s5 + $0xc0] sm:$0xff] }
 0x1c9   : > { %1712 = vmatpush.msra.mxu1 %v1677_v56 }
 0x1ca   : > { %1592 = vmatpush.msrb.mxu3 %v1496_v45  ;;  %v1656_v45 = vld [vmem:[%s2918_s5 + $0x18] sm:$0xff] }
 0x1cb   : > { %2004 = vmatmul.msk.f32.vlgmr.msrb.gmra.mxu3 %vm1574_vm7, %v2214_v29  ;;  %1713 = vmatpush.msra.mxu1 %v1676_v58 }
 0x1cc   : > { %1685 = vmatpush.msra.mxu3 %v1668_v59  ;;  %v1618_v59 = vld [vmem:[%s2917_s4 + $0x8] sm:$0xff] }
 0x1cd   : > { %1742 = vmatpush.msra.mxu2 %v1618_v59 }
 0x1ce   : > { %1686 = vmatpush.msra.mxu3 %v1667_v62  ;;  %v1675_v62 = vld [vmem:[%s2918_s5 + $0xb0] sm:$0xff] }
 0x1cf   : > { %v1463_v5 = vpop.f32.mrf.mxu3  ;;  %1714 = vmatpush.msra.mxu1 %v1675_v62  ;;  %1743 = vmatpush.msra.mxu2 %v1617_v63  ;;  %v1571_v24 = vpop.f32.mrf.mxu1 }
 0x1d0   : > { %1687 = vmatpush.msra.mxu3 %v1666_v2  ;;  %v1464_v27 = vadd.f32 %v1463_v5, %v1440_v33  ;;  %v1636_v33 = vld [vmem:[%s2917_s4 + $0x98] sm:$0xff]  ;;  %v1653_v2 = vld [vmem:[%s2918_s5] sm:$0xff] }
 0x1d1   : > { %1715 = vmatpush.msra.mxu1 %v1674_v1  ;;  %v1652_v5 = vld [vmem:[%s2917_s4 + $0x118] sm:$0xff] }
 0x1d2   : > { %1688 = vmatpush.msra.mxu3 %v1665_v6  ;;  %v1487_v8 = vadd.f32 %v1486_v4, %v1464_v27  ;;  %v1672_v4 = vld [vmem:[%s2918_s5 + $0x98] sm:$0xff]  ;;  %v1531_v6 = vpop.f32.mrf.mxu0 }
 0x1d3   : > { %1716 = vmatpush.msra.mxu1 %v1673_v3  ;;  %1744 = vmatmul.f32.vlgmr.msra.gmra.mxu2 %v1531_v6 }
 0x1d4   : > { %1689 = vmatpush.msra.mxu3 %v1664_v13  ;;  %v1493_v43 = vadd.f32 %v1487_v8, %v1240_v36  ;;  %v1650_v13 = vld [vmem:[%s2917_s4 + $0x108] sm:$0xff]  ;;  %v1838_v8 = vld [vmem:[%s2921_s8 + $0x78] sm:$0xff]  ;;  %v1833_v36 = vld [vmem:[%s2921_s8 + $0x50] sm:$0xff] }
 0x1d5   : > { %1717 = vmatpush.msra.mxu1 %v1672_v4  ;;  %1839 = vmatpush.msrb.mxu2 %v1838_v8 }
 0x1d6   : > { %1690 = vmatpush.msra.mxu3 %v1663_v22  ;;  %v1497_v17 = vmax.f32 %v1493_v43, 0.0  ;;  %v1829_v43 = vld [vmem:[%s2921_s8 + $0x30] sm:$0xff] }
 0x1d7   : > { %v1466_v31 = vpop.f32.mrf.mxu3  ;;  %1718 = vmatpush.msra.mxu1 %v1671_v11 }
 0x1d8   : > { %v1467_v25 = vadd.f32 %v1466_v31, %v1443_v30  ;;  %1691 = vmatpush.msra.mxu3 %v1662_v7  ;;  %v1797_v7 = vld [vmem:[%s2920_s7 + $0x38] sm:$0xff]  ;;  %v1792_v31 = vld [vmem:[%s2920_s7 + $0x10] sm:$0xff] }
 0x1d9   : > { %1719 = vmatpush.msra.mxu1 %v1670_v16  ;;  %v1793_v30 = vld [vmem:[%s2920_s7 + $0x18] sm:$0xff] }
 0x1da   : > { %v1490_v40 = vadd.f32 %v1489_v39, %v1467_v25  ;;  %1692 = vmatpush.msra.mxu3 %v1661_v32  ;;  %v1551_v18 = vpop.f32.mrf.mxu0  ;;  %v1791_v32 = vld [vmem:[%s2920_s7 + $0x8] sm:$0xff]  ;;  %v1837_v25 = vld [vmem:[%s2921_s8 + $0x70] sm:$0xff] }
 0x1db   : > { %1720 = vmatpush.msra.mxu1 %v1669_v10  ;;  %v1836_v39 = vld [vmem:[%s2921_s8 + $0x68] sm:$0xff]  ;;  %1840 = vmatpush.msrb.mxu2 %v1837_v25 }
 0x1dc   : > { %v1495_v20 = vadd.f32 %v1490_v40, %v1243_v37  ;;  %1693 = vmatpush.msra.mxu3 %v1660_v34  ;;  %v1835_v34 = vld [vmem:[%s2921_s8 + $0x60] sm:$0xff]  ;;  %v1832_v37 = vld [vmem:[%s2921_s8 + $0x48] sm:$0xff] }
 0x1dd   : > { %1810 = vmatpush.msrb.mxu1 %v1797_v7  ;;  %1841 = vmatpush.msrb.mxu2 %v1836_v39  ;;  %v1831_v40 = vld [vmem:[%s2921_s8 + $0x40] sm:$0xff] }
 0x1de   : > { %v1499_v49 = vmax.f32 %v1495_v20, 0.0  ;;  %1694 = vmatpush.msra.mxu3 %v1659_v42  ;;  %v1830_v42 = vld [vmem:[%s2921_s8 + $0x38] sm:$0xff] }
 0x1df   : > { %1811 = vmatpush.msrb.mxu1 %v1796_v26  ;;  %1842 = vmatpush.msrb.mxu2 %v1835_v34 }
 0x1e0   : > { %1611 = vmatpush.msrb.mxu0 %v1499_v49  ;;  %1695 = vmatpush.msra.mxu3 %v1658_v47  ;;  %v1828_v47 = vld [vmem:[%s2921_s8 + $0x28] sm:$0xff]  ;;  %v1827_v49 = vld [vmem:[%s2921_s8 + $0x20] sm:$0xff] }
 0x1e1   : > { %1812 = vmatpush.msrb.mxu1 %v1795_v28  ;;  %1843 = vmatpush.msrb.mxu2 %v1834_v35 }
 0x1e2   : > { %1612 = vmatpush.msrb.mxu0 %v1497_v17  ;;  %1696 = vmatpush.msra.mxu3 %v1657_v21 }
 0x1e3   : > { %2005 = vmatmul.msk.f32.vlgmr.msrb.gmra.mxu0 %vm1574_vm7, %v2214_v29  ;;  %v1643_v29 = vld [vmem:[%s2917_s4 + $0xd0] sm:$0xff]  ;;  %1813 = vmatpush.msrb.mxu1 %v1794_v41 }
 0x1e4   : > { %1748 = vmatpush.msra.mxu0 %v1648_v23  ;;  %1697 = vmatpush.msra.mxu3 %v1656_v45 }
 0x1e5   : > { %1814 = vmatpush.msrb.mxu1 %v1793_v30  ;;  %1844 = vmatpush.msrb.mxu2 %v1833_v36 }
 0x1e6   : > { %1749 = vmatpush.msra.mxu0 %v1647_v38  ;;  %1698 = vmatpush.msra.mxu3 %v1655_v61  ;;  %v1826_v38 = vld [vmem:[%s2921_s8 + $0x18] sm:$0xff] }
 0x1e7   : > { %1815 = vmatpush.msrb.mxu1 %v1792_v31  ;;  %1845 = vmatpush.msrb.mxu2 %v1832_v37 }
 0x1e8   : > { %1750 = vmatpush.msra.mxu0 %v1646_v57  ;;  %1699 = vmatpush.msra.mxu3 %v1654_v54 }
 0x1e9   : > { %1816 = vmatpush.msrb.mxu1 %v1791_v32  ;;  %1846 = vmatpush.msrb.mxu2 %v1831_v40 }
 0x1ea   : > { %1751 = vmatpush.msra.mxu0 %v1645_v46  ;;  %1700 = vmatpush.msra.mxu3 %v1653_v2 }
 0x1eb   : > { %1817 = vmatpush.msrb.mxu1 %v1790_v19  ;;  %1847 = vmatpush.msrb.mxu2 %v1830_v42 }
 0x1ec   : > { %1752 = vmatpush.msra.mxu0 %v1644_v50  ;;  %1780 = vmatpush.msrb.mxu3 %v1652_v5  ;;  %v1825_v50 = vld [vmem:[%s2921_s8 + $0x10] sm:$0xff] }
 0x1ed   : > { %1848 = vmatpush.msrb.mxu2 %v1829_v43 }
 0x1ee   : > { %1753 = vmatpush.msra.mxu0 %v1643_v29  ;;  %1781 = vmatpush.msrb.mxu3 %v1651_v12 }
 0x1ef   : > { %1849 = vmatpush.msrb.mxu2 %v1828_v47 }
 0x1f0   : > { %1754 = vmatpush.msra.mxu0 %v1642_v51  ;;  %1782 = vmatpush.msrb.mxu3 %v1650_v13 }
 0x1f1   : > { %1850 = vmatpush.msrb.mxu2 %v1827_v49 }
 0x1f2   : > { %1755 = vmatpush.msra.mxu0 %v1641_v52  ;;  %1783 = vmatpush.msrb.mxu3 %v1649_v15 }
 0x1f3   : > { %1851 = vmatpush.msrb.mxu2 %v1826_v38 }
 0x1f4   : > { %1756 = vmatpush.msra.mxu0 %v1640_v48  ;;  %v1788_v48 = vld [vmem:[%s2919_s6] sm:$0x1] }
 0x1f5   : > { %1852 = vmatpush.msrb.mxu2 %v1825_v50 }
 0x1f6   : > { %1757 = vmatpush.msra.mxu0 %v1639_v55  ;;  %v1823_v55 = vld [vmem:[%s2921_s8] sm:$0xff] }
 0x1f7   : > { %1853 = vmatpush.msrb.mxu2 %v1824_v53 }
 0x1f8   : > { %1758 = vmatpush.msra.mxu0 %v1638_v60 }
 0x1f9   : > { %1854 = vmatpush.msrb.mxu2 %v1823_v55 }
 0x1fa   : > { %1759 = vmatpush.msra.mxu0 %v1637_v0 }
 0x1fc   : > { %1760 = vmatpush.msra.mxu0 %v1636_v33 }
 0x1fe   : > { %1761 = vmatpush.msra.mxu0 %v1635_v14 }
 0x200   : > { %1762 = vmatpush.msra.mxu0 %v1634_v44 }
 0x202   : > { %1763 = vmatpush.msra.mxu0 %v1633_v9 }
 0x203   : > { %1764 = vmatmul.f32.vlgmr.msra.gmra.mxu0 %v1551_v18 }
 0x24e   : > { %v1594_v22 = vpop.f32.mrf.mxu3 }
 0x24f   : > { %1701 = vmatmul.f32.vlgmr.msra.gmra.mxu3 %v1594_v22 }
 0x256   : > { %v1745_v57 = vpop.f32.mrf.mxu2 }
 0x257   : > { %2006 = vmatmul.msk.f32.vlgmr.msrb.gmra.mxu3 %vm765_vm2, %v1571_v24 }
 0x260   : > { %v1614_v27 = vpop.f32.mrf.mxu0 }
 0x261   : > { %1721 = vmatmul.f32.vlgmr.msra.gmra.mxu1 %v1614_v27 }
 0x280   : > { %v1765_v29 = vpop.f32.mrf.mxu0 }
 0x2d2   : > { %v1702_v20 = vpop.f32.mrf.mxu3 }
 0x2da   : > { %v1785_v51 = vpop.f32.mrf.mxu3 }
 0x2de   : > { %v1722_v17 = vpop.f32.mrf.mxu1 }
 0x2df   : > { %v1723_v23 = vadd.f32 %v1722_v17, %v1702_v20 }
 0x2e1   : > { %v1746_v46 = vadd.f32 %v1745_v57, %v1723_v23 }
 0x2e3   : > { %v1766_v52 = vadd.f32 %v1765_v29, %v1746_v46 }
 0x2e5   : > { %v1786_v21 = vadd.f32 %v1785_v51, %v1766_v52 }
 0x2e7   : > { %v1789_v56 = vadd.f32 %v1788_v48, %v1786_v21 }
 0x2e9   : > { %2007 = vmatmul.msk.f32.vlgmr.msrb.gmra.mxu1 %vm1798_vm8, %v1789_v56 }
 0x366   : > { %v1819_v45 = vpop.f32.mrf.mxu1 }
 0x367   : > { %v1822_v58 = vmax.f32 %v1819_v45, 0.0 }
 0x369   : > { %1855 = vmatmul.f32.vlgmr.msrb.gmra.mxu2 %v1822_v58 }
 0x3ec   : > { %v1856_v59 = vpop.f32.mrf.mxu2 }
 0x3ed   : > { %1859 = vst [vmem:[%s358_s27] sm:$0x1] %v1856_v59 }
 0x3ee   : > { %2163 = shalt.err (!%p2160_p8)
}
 0x3ef   : > { %2019 = dma.vmem_to_hbm [thread:$0]  (%p2303_p5), %s1872_s28, 16, %s1874_s29, %s1861_s14  }
 0x3f0 PF: > { %p2036_p9 = scmp.ge.s32.totalorder %s2206_s12, 2  ;;  %s1885_s21 = sand.u32 1, %s2194_s30  }
 0x3f1   : > { %s1886_s25 = scalar_lea.sflag [#allocation5], %s1885_s21 }
 0x3f2   : > { %p2029_p10 = pnand %p2036_p9, %p2307_p6 }
 0x3f4   : > { %p2030_p11 = pneg %p2029_p10 }
 0x3f6   : > { %2189 = dma.done.wait (%p2030_p11), %s1886_s25, 16  }
 0x3f7   : > { %2191 = vsyncadd (%p2030_p11), %s1886_s25, 4294967280  ;;  %p21_p12 = scmp.ge.s32.totalorder %s2290_s15, 4   ;;  %s2928_s30 = smov %s2198_s10 }
 0x3f8   : > { %s2929_s10 = smov %s2202_s11  ;;  %s2930_s11 = smov %s2301_s18 }
 0x3f9   : > { %s2931_s12 = smov %s2290_s15  ;;  %23 = sbr.rel (!%p21_p12) target bundleno = 7 (0x7), region = 104 }
 0x3fe   :  { %1891 = vsyncpa [#allocation4], 1 }
 0x3ff   :  { %1893 = vsyncpa [#allocation4 + $0x1], 1 }
 0x400   :  { %1894 = vsyncpa [#allocation7], 1 }
 0x401   :  { %1895 = vsyncpa [#allocation5], 1 }
 0x402   :  { %1897 = vsyncpa [#allocation5 + $0x1], 1 }

</bundles_post_ra>
